<compile_context>
chip_gen: v6e
topology: v6e:2x2x1
jax: 0.10.0
libtpu: 0.0.40
codegen_flags: <defaults>
</compile_context>

<pallas_src>
import math

import jax
import jax.numpy as jnp
from jax import lax
from jax.experimental import pallas as pl
from jax.experimental.pallas import tpu as pltpu

LN_EPS = 1e-5                      # nn.LayerNorm default
BN_EPS = 1e-4                      # nn.BatchNorm2d(eps=0.0001)
_HP = jax.lax.Precision.HIGHEST    # keep the f32 reference math truly f32


# --------------------------------------------------------------------------------------
# Kernel 1: fused patch embedding + transformer encoder, one grid step per batch element.
# --------------------------------------------------------------------------------------
def _pe_encoder_call(patches_bf16, w_pe_bf16, posb, g1, b1, wq, bq, wk, bk, wv, bv,
                     wo_h, bo_h, g2, b2, w1, c1, w2, c2, *, B, N, K, E, H, EH, F):
    scale = 1.0 / math.sqrt(EH)

    def kernel(p_ref, wpe_ref, posb_ref, g1_ref, b1_ref,
               wq_ref, bq_ref, wk_ref, bk_ref, wv_ref, bv_ref,
               wo_ref, bo_ref, g2_ref, b2_ref, w1_ref, c1_ref, w2_ref, c2_ref,
               out_ref):
        # PatchEmbedding: (N, K) @ (K, E) on the MXU, bf16 inputs / f32 accumulation,
        # conv bias already folded into posb.
        x = jnp.dot(p_ref[...], wpe_ref[...],
                    preferred_element_type=jnp.float32) + posb_ref[...]          # (N, E)

        # LayerNorm 1
        mu = jnp.mean(x, axis=-1, keepdims=True)
        xc = x - mu
        var = jnp.mean(xc * xc, axis=-1, keepdims=True)
        h1 = xc * lax.rsqrt(var + LN_EPS) * g1_ref[...] + b1_ref[...]            # (N, E)

        # Fused QKV projections (Linear(E, EH) o MHA in_proj folded at trace time)
        q = jnp.dot(h1, wq_ref[...], preferred_element_type=jnp.float32) + bq_ref[...]
        k = jnp.dot(h1, wk_ref[...], preferred_element_type=jnp.float32) + bk_ref[...]
        v = jnp.dot(h1, wv_ref[...], preferred_element_type=jnp.float32) + bv_ref[...]

        # Single-head scaled-dot-product attention over EH
        s = lax.dot_general(q, k, (((1,), (1,)), ((), ())),
                            preferred_element_type=jnp.float32) * scale          # (N, N)
        s = s - jnp.max(s, axis=-1, keepdims=True)
        p = jnp.exp(s)
        p = p / jnp.sum(p, axis=-1, keepdims=True)
        ctx = jnp.dot(p, v, preferred_element_type=jnp.float32)                  # (N, EH)

        # Per head: out-proj slice, SpecialResidualAdd (residual = patch embedding),
        # LayerNorm 2, FeedForward, ResidualAdd.
        for h in range(H):
            att = jnp.dot(ctx, wo_ref[h],
                          preferred_element_type=jnp.float32) + bo_ref[h]        # (N, E)
            y = att + x
            mu2 = jnp.mean(y, axis=-1, keepdims=True)
            yc = y - mu2
            var2 = jnp.mean(yc * yc, axis=-1, keepdims=True)
            h2 = yc * lax.rsqrt(var2 + LN_EPS) * g2_ref[...] + b2_ref[...]
            f = jnp.dot(h2, w1_ref[...], preferred_element_type=jnp.float32) + c1_ref[...]
            # TODO(synk): tanh-approximate GELU in-kernel; PyTorch nn.GELU default is exact
            # erf (difference <= ~3e-4 per element, covered by the test tolerance).
            f = jax.nn.gelu(f, approximate=True)
            f = jnp.dot(f, w2_ref[...], preferred_element_type=jnp.float32) + c2_ref[...]
            out_ref[h] = (f + y).astype(out_ref.dtype)

    # Advisory cost estimate so XLA can schedule around the call (review item).
    flops = B * (2 * N * K * E + 3 * 2 * N * E * EH + 2 * 2 * N * N * EH
                 + H * (2 * N * EH * E + 2 * N * E * F + 2 * N * F * E))
    transcendentals = B * (N * N + H * N * F)
    bytes_accessed = (2 * (B * N * K + K * E)
                      + 4 * (N * E + 4 * E + 3 * (E * EH + EH) + H * EH * E + H * E
                             + E * F + F + F * E + E)
                      + 4 * B * H * N * E)

    return pl.pallas_call(
        kernel,
        out_shape=jax.ShapeDtypeStruct((B, H, N, E), jnp.float32),
        grid_spec=pltpu.PrefetchScalarGridSpec(
            num_scalar_prefetch=0,
            grid=(B,),
            in_specs=[
                pl.BlockSpec((None, N, K), lambda b: (b, 0, 0)),     # patches (bf16)
                pl.BlockSpec((K, E), lambda b: (0, 0)),              # patch-embed weight (bf16)
                pl.BlockSpec((N, E), lambda b: (0, 0)),              # positions + conv bias
                pl.BlockSpec((1, E), lambda b: (0, 0)),              # ln1 gamma
                pl.BlockSpec((1, E), lambda b: (0, 0)),              # ln1 beta
                pl.BlockSpec((E, EH), lambda b: (0, 0)),             # fused Wq
                pl.BlockSpec((1, EH), lambda b: (0, 0)),             # fused bq
                pl.BlockSpec((E, EH), lambda b: (0, 0)),             # fused Wk
                pl.BlockSpec((1, EH), lambda b: (0, 0)),             # fused bk
                pl.BlockSpec((E, EH), lambda b: (0, 0)),             # fused Wv
                pl.BlockSpec((1, EH), lambda b: (0, 0)),             # fused bv
                pl.BlockSpec((H, EH, E), lambda b: (0, 0, 0)),       # per-head out-proj W
                pl.BlockSpec((H, 1, E), lambda b: (0, 0, 0)),        # per-head out-proj b
                pl.BlockSpec((1, E), lambda b: (0, 0)),              # ln2 gamma
                pl.BlockSpec((1, E), lambda b: (0, 0)),              # ln2 beta
                pl.BlockSpec((E, F), lambda b: (0, 0)),              # FF W1
                pl.BlockSpec((1, F), lambda b: (0, 0)),              # FF b1
                pl.BlockSpec((F, E), lambda b: (0, 0)),              # FF W2
                pl.BlockSpec((1, E), lambda b: (0, 0)),              # FF b2
            ],
            out_specs=pl.BlockSpec((None, H, N, E), lambda b: (b, 0, 0, 0)),
        ),
        compiler_params=pltpu.CompilerParams(
            dimension_semantics=("parallel",)),   # batch steps independent -> 2 TCs on v7x
        cost_estimate=pl.CostEstimate(flops=flops, transcendentals=transcendentals,
                                      bytes_accessed=bytes_accessed),
    )(patches_bf16, w_pe_bf16, posb, g1, b1, wq, bq, wk, bk, wv, bv,
      wo_h, bo_h, g2, b2, w1, c1, w2, c2)


# --------------------------------------------------------------------------------------
# Kernel 2: 1x1 conv (BatchNorm folded) + ReLU, lane-dense over img*img.
# --------------------------------------------------------------------------------------
def _conv_bn_relu_kernel(x_ref, w_ref, b_ref, out_ref):
    y = jnp.dot(w_ref[...], x_ref[...], preferred_element_type=jnp.float32) + b_ref[...]
    out_ref[...] = jnp.maximum(y, 0.0).astype(out_ref.dtype)


def _conv_bn_relu_call(y, w_eff, b_eff):
    B, H, P = y.shape
    return pl.pallas_call(
        _conv_bn_relu_kernel,
        out_shape=jax.ShapeDtypeStruct((B, H, P), jnp.float32),
        grid_spec=pltpu.PrefetchScalarGridSpec(
            num_scalar_prefetch=0,
            grid=(B,),
            in_specs=[
                pl.BlockSpec((None, H, P), lambda b: (b, 0, 0)),
                pl.BlockSpec((H, H), lambda b: (0, 0)),
                pl.BlockSpec((H, 1), lambda b: (0, 0)),
            ],
            out_specs=pl.BlockSpec((None, H, P), lambda b: (b, 0, 0)),
        ),
        compiler_params=pltpu.CompilerParams(dimension_semantics=("parallel",)),
    )(y, w_eff, b_eff)


# --------------------------------------------------------------------------------------
# Full TransformerBlock forward (wrapper: glue reshapes + trace-time parameter folding).
# --------------------------------------------------------------------------------------
def transformer_block_forward(x, params, patch_size, img_size):
    B, C, Hs, Ws = x.shape
    p = patch_size
    E = p * p
    Hp, Wp = Hs // p, Ws // p
    N = Hp * Wp
    K = C * p * p
    H = params["deconv_w"].shape[0]          # out_channels == attention "heads"
    EH = E * H
    F = params["ff_w1"].shape[0]

    # Patchify (B,C,H,W) -> (B, N, C*p*p); same flatten order as the Conv2d weight.
    # TODO(synk): for large images this transpose is an extra HBM round trip; fuse it into
    # the kernel's input DMA (memory_space=pl.ANY + make_async_copy) instead of materializing.
    patches = x.reshape(B, C, Hp, p, Wp, p).transpose(0, 2, 4, 1, 3, 5).reshape(B, N, K)

    # ---- trace-time parameter folding ----
    w_pe = params["conv_w"].reshape(E, K).T                                   # (K, E)
    posb = params["positions"] + params["conv_b"][None, :]                    # bias folded into positions

    in_w, in_b = params["in_w"], params["in_b"]
    wq = jnp.einsum("me,jm->ej", params["wq"], in_w[:EH], precision=_HP)      # (E, EH)
    wk = jnp.einsum("me,jm->ej", params["wk"], in_w[EH:2 * EH], precision=_HP)
    wv = jnp.einsum("me,jm->ej", params["wv"], in_w[2 * EH:], precision=_HP)
    bq = (jnp.einsum("m,jm->j", params["bq"], in_w[:EH], precision=_HP) + in_b[:EH]).reshape(1, EH)
    bk = (jnp.einsum("m,jm->j", params["bk"], in_w[EH:2 * EH], precision=_HP) + in_b[EH:2 * EH]).reshape(1, EH)
    bv = (jnp.einsum("m,jm->j", params["bv"], in_w[2 * EH:], precision=_HP) + in_b[2 * EH:]).reshape(1, EH)

    wo_h = params["out_w"].reshape(H, E, EH).transpose(0, 2, 1)               # (H, EH, E) per-head out-proj
    bo_h = params["out_b"].reshape(H, 1, E)

    g1 = params["ln1_g"].reshape(1, E)
    b1 = params["ln1_b"].reshape(1, E)
    g2 = params["ln2_g"].reshape(1, E)
    b2 = params["ln2_b"].reshape(1, E)
    w1 = params["ff_w1"].T                                                    # (E, F)
    c1 = params["ff_b1"].reshape(1, F)
    w2 = params["ff_w2"].T                                                    # (F, E)
    c2 = params["ff_b2"].reshape(1, E)

    # ---- kernel 1: fused patch embedding + encoder ----
    enc = _pe_encoder_call(
        patches.astype(jnp.bfloat16), w_pe.astype(jnp.bfloat16), posb,
        g1, b1, wq, bq, wk, bk, wv, bv, wo_h, bo_h, g2, b2, w1, c1, w2, c2,
        B=B, N=N, K=K, E=E, H=H, EH=EH, F=F)                                  # (B, H, N, E)

    # ---- glue: rearrange 'b h (n o) (s p) -> b h (n s) (o p)' ----
    n = Hs // p
    spat = enc.reshape(B, H, n, n, p, p).transpose(0, 1, 2, 4, 3, 5)
    spat = spat.reshape(B, H, Hs * Ws)                                        # lane-dense (H, img*img)

    # ---- kernel 2: 1x1 conv + eval-mode BatchNorm (folded) + ReLU ----
    # TODO(synk): eval-mode BatchNorm (running stats); train-mode batch statistics not implemented.
    bn_scale = params["bn_g"] / jnp.sqrt(params["bn_rv"] + BN_EPS)
    w_eff = params["deconv_w"].reshape(H, H) * bn_scale[:, None]
    b_eff = ((params["deconv_b"] - params["bn_rm"]) * bn_scale + params["bn_b"]).reshape(H, 1)

    out = _conv_bn_relu_call(spat, w_eff, b_eff)                              # (B, H, img*img)
    return out.reshape(B, H, Hs, Ws)


# --------------------------------------------------------------------------------------
# Pure-JAX reference mirroring the PyTorch module (eval mode, dropout p=0).
# The patch-embedding matmul mirrors the kernel's bf16 MXU inputs / f32 accumulation
# (the patchify-vs-Conv2d ordering is separately validated in f32 in __main__);
# everything else is f32 and unfolded, with PyTorch's exact (erf) GELU.
# --------------------------------------------------------------------------------------
def reference_transformer_block(x, params, patch_size, img_size):
    B, C, Hs, Ws = x.shape
    p = patch_size
    E = p * p
    N = (Hs // p) * (Ws // p)
    H = params["deconv_w"].shape[0]
    EH = E * H

    # PatchEmbedding
    patches = x.reshape(B, C, Hs // p, p, Ws // p, p).transpose(0, 2, 4, 1, 3, 5).reshape(B, N, -1)
    w_flat = params["conv_w"].reshape(E, -1).T
    pe = jnp.einsum("bnk,ke->bne", patches.astype(jnp.bfloat16), w_flat.astype(jnp.bfloat16),
                    preferred_element_type=jnp.float32)
    pe = pe + params["conv_b"][None, None, :] + params["positions"][None]

    def layernorm(z, g, b):
        m = jnp.mean(z, axis=-1, keepdims=True)
        v = jnp.mean((z - m) ** 2, axis=-1, keepdims=True)
        return (z - m) / jnp.sqrt(v + LN_EPS) * g + b

    # Encoder block 1: SpecialResidualAdd(LayerNorm -> MultiHeadAttention -> Dropout)
    h1 = layernorm(pe, params["ln1_g"], params["ln1_b"])
    q0 = jnp.einsum("bne,me->bnm", h1, params["wq"], precision=_HP) + params["bq"]
    k0 = jnp.einsum("bne,me->bnm", h1, params["wk"], precision=_HP) + params["bk"]
    v0 = jnp.einsum("bne,me->bnm", h1, params["wv"], precision=_HP) + params["bv"]
    in_w, in_b = params["in_w"], params["in_b"]
    q = jnp.einsum("bnm,jm->bnj", q0, in_w[:EH], precision=_HP) + in_b[:EH]
    k = jnp.einsum("bnm,jm->bnj", k0, in_w[EH:2 * EH], precision=_HP) + in_b[EH:2 * EH]
    v = jnp.einsum("bnm,jm->bnj", v0, in_w[2 * EH:], precision=_HP) + in_b[2 * EH:]
    s = jnp.einsum("bqj,bkj->bqk", q, k, precision=_HP) / math.sqrt(EH)
    a = jax.nn.softmax(s, axis=-1)
    ctx = jnp.einsum("bqk,bkj->bqj", a, v, precision=_HP)
    att = jnp.einsum("bnj,mj->bnm", ctx, params["out_w"], precision=_HP) + params["out_b"]
    att4 = att.reshape(B, N, H, E).transpose(0, 2, 1, 3)       # 'b n (h d) -> b h n d'
    enc1 = att4 + pe[:, None, :, :]                            # SpecialResidualAdd

    # Encoder block 2: ResidualAdd(LayerNorm -> FeedForward -> Dropout)
    h2 = layernorm(enc1, params["ln2_g"], params["ln2_b"])
    f = jnp.einsum("bhne,fe->bhnf", h2, params["ff_w1"], precision=_HP) + params["ff_b1"]
    f = jax.nn.gelu(f, approximate=False)                      # PyTorch nn.GELU default (erf)
    f = jnp.einsum("bhnf,ef->bhne", f, params["ff_w2"], precision=_HP) + params["ff_b2"]
    enc2 = f + enc1

    # rearrange 'b h (n o) (s p) -> b h (n s) (o p)'
    n = Hs // p
    t = enc2.reshape(B, H, n, n, p, p).transpose(0, 1, 2, 4, 3, 5).reshape(B, H, Hs, Ws)

    # deconv (1x1 Conv2d) + BatchNorm2d (eval) + ReLU
    y = jnp.einsum("oc,bcij->boij", params["deconv_w"].reshape(H, H), t, precision=_HP)
    y = y + params["deconv_b"][None, :, None, None]
    y = (y - params["bn_rm"][None, :, None, None]) / jnp.sqrt(params["bn_rv"] + BN_EPS)[None, :, None, None]
    y = y * params["bn_g"][None, :, None, None] + params["bn_b"][None, :, None, None]
    return jnp.maximum(y, 0.0)


if __name__ == "__main__":
    B, in_channels, out_channels = 2, 4, 4
    patch_size, img_size = 4, 16
    E = patch_size ** 2                       # 16 (emb_size == patch_size**2)
    N = (img_size // patch_size) ** 2         # 16 patches
    H = out_channels                          # attention "heads" / encoder channels
    EH = E * H                                # 64
    F = 4 * E                                 # 64 (FFN expansion 4)
    K = in_channels * patch_size ** 2         # 64

    ks = jax.random.split(jax.random.PRNGKey(0), 28)

    def rnd(i, shape, scale=1.0):
        return scale * jax.random.normal(ks[i], shape, dtype=jnp.float32)

    x = rnd(0, (B, in_channels, img_size, img_size))
    params = {
        # PatchEmbedding
        "conv_w": rnd(1, (E, in_channels, patch_size, patch_size), 0.05),
        "conv_b": rnd(2, (E,), 0.05),
        "positions": rnd(3, (N, E)),
        # LayerNorms
        "ln1_g": 1.0 + rnd(4, (E,), 0.1), "ln1_b": rnd(5, (E,), 0.1),
        "ln2_g": 1.0 + rnd(6, (E,), 0.1), "ln2_b": rnd(7, (E,), 0.1),
        # MultiHeadAttention: Linear(E, E*H) x3 then nn.MultiheadAttention(E*H, 1)
        "wq": rnd(8, (EH, E), 0.1), "bq": rnd(9, (EH,), 0.1),
        "wk": rnd(10, (EH, E), 0.1), "bk": rnd(11, (EH,), 0.1),
        "wv": rnd(12, (EH, E), 0.1), "bv": rnd(13, (EH,), 0.1),
        "in_w": rnd(14, (3 * EH, EH), 0.1), "in_b": rnd(15, (3 * EH,), 0.1),
        "out_w": rnd(16, (EH, EH), 0.1), "out_b": rnd(17, (EH,), 0.1),
        # FeedForwardBlock
        "ff_w1": rnd(18, (F, E), 0.1), "ff_b1": rnd(19, (F,), 0.1),
        "ff_w2": rnd(20, (E, F), 0.1), "ff_b2": rnd(21, (E,), 0.1),
        # deconv (1x1) + BatchNorm2d (eval-mode running stats)
        "deconv_w": rnd(22, (H, H, 1, 1), 0.3),
        "deconv_b": rnd(23, (H,), 0.1),
        "bn_g": 1.0 + rnd(24, (H,), 0.2),
        "bn_b": rnd(25, (H,), 0.2),
        "bn_rm": rnd(26, (H,), 0.1),
        "bn_rv": 0.5 + jax.random.uniform(ks[27], (H,), dtype=jnp.float32),
    }

    out = transformer_block_forward(x, params, patch_size, img_size)
    out = jax.block_until_ready(out)
    assert out.shape == (B, out_channels, img_size, img_size)

    # Check 1: the patchify-as-matmul used by the kernel matches a real strided Conv2d (f32).
    patches = x.reshape(B, in_channels, img_size // patch_size, patch_size,
                        img_size // patch_size, patch_size).transpose(0, 2, 4, 1, 3, 5).reshape(B, N, K)
    w_flat = params["conv_w"].reshape(E, K).T
    lin = jnp.einsum("bnk,ke->bne", patches, w_flat, precision=_HP) + params["conv_b"]
    conv = lax.conv_general_dilated(x, params["conv_w"], (patch_size, patch_size), "VALID",
                                    dimension_numbers=("NCHW", "OIHW", "NCHW"), precision=_HP)
    conv = (conv + params["conv_b"][None, :, None, None]).reshape(B, E, N).transpose(0, 2, 1)
    assert jnp.allclose(lin, conv, atol=1e-4, rtol=1e-4)

    # Check 2: full TransformerBlock forward vs. the pure-JAX reference of the PyTorch module.
    ref = jax.block_until_ready(reference_transformer_block(x, params, patch_size, img_size))
    assert jnp.allclose(out, ref, atol=2e-3, rtol=2e-3), \
        f"max abs diff {jnp.max(jnp.abs(out - ref))}"

    print("KERNEL_OK")
</pallas_src>

<mosaic_0001>
module attributes {stable_mosaic.version = 11 : i64} {
  func.func @kernel(%arg0: i32, %arg1: memref<1x16x64xbf16, #tpu.memory_space<vmem>>, %arg2: memref<64x16xbf16, #tpu.memory_space<vmem>>, %arg3: memref<16x16xf32, #tpu.memory_space<vmem>>, %arg4: memref<1x16xf32, #tpu.memory_space<vmem>>, %arg5: memref<1x16xf32, #tpu.memory_space<vmem>>, %arg6: memref<16x64xf32, #tpu.memory_space<vmem>>, %arg7: memref<1x64xf32, #tpu.memory_space<vmem>>, %arg8: memref<16x64xf32, #tpu.memory_space<vmem>>, %arg9: memref<1x64xf32, #tpu.memory_space<vmem>>, %arg10: memref<16x64xf32, #tpu.memory_space<vmem>>, %arg11: memref<1x64xf32, #tpu.memory_space<vmem>>, %arg12: memref<4x64x16xf32, #tpu.memory_space<vmem>>, %arg13: memref<4x1x16xf32, #tpu.memory_space<vmem>>, %arg14: memref<1x16xf32, #tpu.memory_space<vmem>>, %arg15: memref<1x16xf32, #tpu.memory_space<vmem>>, %arg16: memref<16x64xf32, #tpu.memory_space<vmem>>, %arg17: memref<1x64xf32, #tpu.memory_space<vmem>>, %arg18: memref<64x16xf32, #tpu.memory_space<vmem>>, %arg19: memref<1x16xf32, #tpu.memory_space<vmem>>, %arg20: memref<1x4x16x16xf32, #tpu.memory_space<vmem>>) attributes {dimension_semantics = [#tpu.dimension_semantics<parallel>], iteration_bounds = array<i64: 2>, scalar_prefetch = 0 : i64, scratch_operands = 0 : i64, tpu.core_type = #tpu.core_type<tc>, window_params = [{transform_indices = @transform_0, window_bounds = array<i64: 1, 16, 64>}, {pipeline_mode = #tpu.pipeline_mode<synchronous>, transform_indices = @transform_1, window_bounds = array<i64: 64, 16>}, {pipeline_mode = #tpu.pipeline_mode<synchronous>, transform_indices = @transform_2, window_bounds = array<i64: 16, 16>}, {pipeline_mode = #tpu.pipeline_mode<synchronous>, transform_indices = @transform_3, window_bounds = array<i64: 1, 16>}, {pipeline_mode = #tpu.pipeline_mode<synchronous>, transform_indices = @transform_4, window_bounds = array<i64: 1, 16>}, {pipeline_mode = #tpu.pipeline_mode<synchronous>, transform_indices = @transform_5, window_bounds = array<i64: 16, 64>}, {pipeline_mode = #tpu.pipeline_mode<synchronous>, transform_indices = @transform_6, window_bounds = array<i64: 1, 64>}, {pipeline_mode = #tpu.pipeline_mode<synchronous>, transform_indices = @transform_7, window_bounds = array<i64: 16, 64>}, {pipeline_mode = #tpu.pipeline_mode<synchronous>, transform_indices = @transform_8, window_bounds = array<i64: 1, 64>}, {pipeline_mode = #tpu.pipeline_mode<synchronous>, transform_indices = @transform_9, window_bounds = array<i64: 16, 64>}, {pipeline_mode = #tpu.pipeline_mode<synchronous>, transform_indices = @transform_10, window_bounds = array<i64: 1, 64>}, {pipeline_mode = #tpu.pipeline_mode<synchronous>, transform_indices = @transform_11, window_bounds = array<i64: 4, 64, 16>}, {pipeline_mode = #tpu.pipeline_mode<synchronous>, transform_indices = @transform_12, window_bounds = array<i64: 4, 1, 16>}, {pipeline_mode = #tpu.pipeline_mode<synchronous>, transform_indices = @transform_13, window_bounds = array<i64: 1, 16>}, {pipeline_mode = #tpu.pipeline_mode<synchronous>, transform_indices = @transform_14, window_bounds = array<i64: 1, 16>}, {pipeline_mode = #tpu.pipeline_mode<synchronous>, transform_indices = @transform_15, window_bounds = array<i64: 16, 64>}, {pipeline_mode = #tpu.pipeline_mode<synchronous>, transform_indices = @transform_16, window_bounds = array<i64: 1, 64>}, {pipeline_mode = #tpu.pipeline_mode<synchronous>, transform_indices = @transform_17, window_bounds = array<i64: 64, 16>}, {pipeline_mode = #tpu.pipeline_mode<synchronous>, transform_indices = @transform_18, window_bounds = array<i64: 1, 16>}, {transform_indices = @transform_19, window_bounds = array<i64: 1, 4, 16, 16>}]} {
    %c0 = arith.constant 0 : index
    %c0_0 = arith.constant 0 : index
    %c0_1 = arith.constant 0 : index
    %0 = vector.load %arg1[%c0, %c0_0, %c0_1] : memref<1x16x64xbf16, #tpu.memory_space<vmem>>, vector<1x16x64xbf16>
    %1 = vector.shape_cast %0 : vector<1x16x64xbf16> to vector<16x64xbf16>
    %c0_2 = arith.constant 0 : index
    %c0_3 = arith.constant 0 : index
    %2 = vector.load %arg2[%c0_2, %c0_3] : memref<64x16xbf16, #tpu.memory_space<vmem>>, vector<64x16xbf16>
    %cst = arith.constant dense<0.000000e+00> : vector<16x16xf32>
    %3 = tpu.matmul %1, %2, %cst {dimension_numbers = #tpu.dot_dimension_numbers<[1], [0], [0], [1], [0, 0, 1, 1], [], []>} : vector<16x64xbf16>, vector<64x16xbf16>, vector<16x16xf32> -> vector<16x16xf32>
    %c0_4 = arith.constant 0 : index
    %c0_5 = arith.constant 0 : index
    %4 = vector.load %arg3[%c0_4, %c0_5] : memref<16x16xf32, #tpu.memory_space<vmem>>, vector<16x16xf32>
    %5 = arith.addf %3, %4 : vector<16x16xf32>
    %cst_6 = arith.constant dense<0.000000e+00> : vector<16xf32>
    %6 = vector.multi_reduction <add>, %5, %cst_6 [1] : vector<16x16xf32> to vector<16xf32>
    %7 = vector.shape_cast %6 : vector<16xf32> to vector<16x1xf32>
    %cst_7 = arith.constant 1.600000e+01 : f32
    %8 = vector.broadcast %cst_7 : f32 to vector<16x1xf32>
    %9 = arith.divf %7, %8 : vector<16x1xf32>
    %10 = vector.broadcast %9 : vector<16x1xf32> to vector<16x16xf32>
    %11 = arith.subf %5, %10 : vector<16x16xf32>
    %12 = arith.mulf %11, %11 : vector<16x16xf32>
    %cst_8 = arith.constant dense<0.000000e+00> : vector<16xf32>
    %13 = vector.multi_reduction <add>, %12, %cst_8 [1] : vector<16x16xf32> to vector<16xf32>
    %14 = vector.shape_cast %13 : vector<16xf32> to vector<16x1xf32>
    %cst_9 = arith.constant 1.600000e+01 : f32
    %15 = vector.broadcast %cst_9 : f32 to vector<16x1xf32>
    %16 = arith.divf %14, %15 : vector<16x1xf32>
    %cst_10 = arith.constant 9.99999974E-6 : f32
    %17 = vector.broadcast %cst_10 : f32 to vector<16x1xf32>
    %18 = arith.addf %16, %17 : vector<16x1xf32>
    %19 = math.rsqrt %18 : vector<16x1xf32>
    %20 = vector.broadcast %19 : vector<16x1xf32> to vector<16x16xf32>
    %21 = arith.mulf %11, %20 : vector<16x16xf32>
    %c0_11 = arith.constant 0 : index
    %c0_12 = arith.constant 0 : index
    %22 = vector.load %arg4[%c0_11, %c0_12] : memref<1x16xf32, #tpu.memory_space<vmem>>, vector<1x16xf32>
    %23 = vector.broadcast %22 : vector<1x16xf32> to vector<16x16xf32>
    %24 = arith.mulf %21, %23 : vector<16x16xf32>
    %c0_13 = arith.constant 0 : index
    %c0_14 = arith.constant 0 : index
    %25 = vector.load %arg5[%c0_13, %c0_14] : memref<1x16xf32, #tpu.memory_space<vmem>>, vector<1x16xf32>
    %26 = vector.broadcast %25 : vector<1x16xf32> to vector<16x16xf32>
    %27 = arith.addf %24, %26 : vector<16x16xf32>
    %c0_15 = arith.constant 0 : index
    %c0_16 = arith.constant 0 : index
    %28 = vector.load %arg6[%c0_15, %c0_16] : memref<16x64xf32, #tpu.memory_space<vmem>>, vector<16x64xf32>
    %cst_17 = arith.constant dense<0.000000e+00> : vector<16x64xf32>
    %29 = tpu.matmul %27, %28, %cst_17 {dimension_numbers = #tpu.dot_dimension_numbers<[1], [0], [0], [1], [0, 0, 1, 1], [], []>} : vector<16x16xf32>, vector<16x64xf32>, vector<16x64xf32> -> vector<16x64xf32>
    %c0_18 = arith.constant 0 : index
    %c0_19 = arith.constant 0 : index
    %30 = vector.load %arg7[%c0_18, %c0_19] : memref<1x64xf32, #tpu.memory_space<vmem>>, vector<1x64xf32>
    %31 = vector.broadcast %30 : vector<1x64xf32> to vector<16x64xf32>
    %32 = arith.addf %29, %31 : vector<16x64xf32>
    %c0_20 = arith.constant 0 : index
    %c0_21 = arith.constant 0 : index
    %33 = vector.load %arg8[%c0_20, %c0_21] : memref<16x64xf32, #tpu.memory_space<vmem>>, vector<16x64xf32>
    %cst_22 = arith.constant dense<0.000000e+00> : vector<16x64xf32>
    %34 = tpu.matmul %27, %33, %cst_22 {dimension_numbers = #tpu.dot_dimension_numbers<[1], [0], [0], [1], [0, 0, 1, 1], [], []>} : vector<16x16xf32>, vector<16x64xf32>, vector<16x64xf32> -> vector<16x64xf32>
    %c0_23 = arith.constant 0 : index
    %c0_24 = arith.constant 0 : index
    %35 = vector.load %arg9[%c0_23, %c0_24] : memref<1x64xf32, #tpu.memory_space<vmem>>, vector<1x64xf32>
    %36 = vector.broadcast %35 : vector<1x64xf32> to vector<16x64xf32>
    %37 = arith.addf %34, %36 : vector<16x64xf32>
    %c0_25 = arith.constant 0 : index
    %c0_26 = arith.constant 0 : index
    %38 = vector.load %arg10[%c0_25, %c0_26] : memref<16x64xf32, #tpu.memory_space<vmem>>, vector<16x64xf32>
    %cst_27 = arith.constant dense<0.000000e+00> : vector<16x64xf32>
    %39 = tpu.matmul %27, %38, %cst_27 {dimension_numbers = #tpu.dot_dimension_numbers<[1], [0], [0], [1], [0, 0, 1, 1], [], []>} : vector<16x16xf32>, vector<16x64xf32>, vector<16x64xf32> -> vector<16x64xf32>
    %c0_28 = arith.constant 0 : index
    %c0_29 = arith.constant 0 : index
    %40 = vector.load %arg11[%c0_28, %c0_29] : memref<1x64xf32, #tpu.memory_space<vmem>>, vector<1x64xf32>
    %41 = vector.broadcast %40 : vector<1x64xf32> to vector<16x64xf32>
    %42 = arith.addf %39, %41 : vector<16x64xf32>
    %cst_30 = arith.constant dense<0.000000e+00> : vector<16x16xf32>
    %43 = tpu.matmul %32, %37, %cst_30 {dimension_numbers = #tpu.dot_dimension_numbers<[1], [1], [0], [0], [0, 0, 1, 0], [], []>} : vector<16x64xf32>, vector<16x64xf32>, vector<16x16xf32> -> vector<16x16xf32>
    %cst_31 = arith.constant 1.250000e-01 : f32
    %44 = vector.broadcast %cst_31 : f32 to vector<16x16xf32>
    %45 = arith.mulf %43, %44 : vector<16x16xf32>
    %cst_32 = arith.constant dense<0xFF800000> : vector<16xf32>
    %46 = vector.multi_reduction <maximumf>, %45, %cst_32 [1] : vector<16x16xf32> to vector<16xf32>
    %47 = vector.shape_cast %46 : vector<16xf32> to vector<16x1xf32>
    %48 = vector.broadcast %47 : vector<16x1xf32> to vector<16x16xf32>
    %49 = arith.subf %45, %48 : vector<16x16xf32>
    %50 = math.exp %49 : vector<16x16xf32>
    %cst_33 = arith.constant dense<0.000000e+00> : vector<16xf32>
    %51 = vector.multi_reduction <add>, %50, %cst_33 [1] : vector<16x16xf32> to vector<16xf32>
    %52 = vector.shape_cast %51 : vector<16xf32> to vector<16x1xf32>
    %53 = vector.broadcast %52 : vector<16x1xf32> to vector<16x16xf32>
    %54 = arith.divf %50, %53 : vector<16x16xf32>
    %cst_34 = arith.constant dense<0.000000e+00> : vector<16x64xf32>
    %55 = tpu.matmul %54, %42, %cst_34 {dimension_numbers = #tpu.dot_dimension_numbers<[1], [0], [0], [1], [0, 0, 1, 1], [], []>} : vector<16x16xf32>, vector<16x64xf32>, vector<16x64xf32> -> vector<16x64xf32>
    %c0_35 = arith.constant 0 : index
    %c0_36 = arith.constant 0 : index
    %c0_37 = arith.constant 0 : index
    %56 = vector.load %arg12[%c0_35, %c0_36, %c0_37] : memref<4x64x16xf32, #tpu.memory_space<vmem>>, vector<1x64x16xf32>
    %57 = vector.shape_cast %56 : vector<1x64x16xf32> to vector<64x16xf32>
    %cst_38 = arith.constant dense<0.000000e+00> : vector<16x16xf32>
    %58 = tpu.matmul %55, %57, %cst_38 {dimension_numbers = #tpu.dot_dimension_numbers<[1], [0], [0], [1], [0, 0, 1, 1], [], []>} : vector<16x64xf32>, vector<64x16xf32>, vector<16x16xf32> -> vector<16x16xf32>
    %c0_39 = arith.constant 0 : index
    %c0_40 = arith.constant 0 : index
    %c0_41 = arith.constant 0 : index
    %59 = vector.load %arg13[%c0_39, %c0_40, %c0_41] : memref<4x1x16xf32, #tpu.memory_space<vmem>>, vector<1x1x16xf32>
    %60 = vector.shape_cast %59 : vector<1x1x16xf32> to vector<1x16xf32>
    %61 = vector.broadcast %60 : vector<1x16xf32> to vector<16x16xf32>
    %62 = arith.addf %58, %61 : vector<16x16xf32>
    %63 = arith.addf %62, %5 : vector<16x16xf32>
    %cst_42 = arith.constant dense<0.000000e+00> : vector<16xf32>
    %64 = vector.multi_reduction <add>, %63, %cst_42 [1] : vector<16x16xf32> to vector<16xf32>
    %65 = vector.shape_cast %64 : vector<16xf32> to vector<16x1xf32>
    %cst_43 = arith.constant 1.600000e+01 : f32
    %66 = vector.broadcast %cst_43 : f32 to vector<16x1xf32>
    %67 = arith.divf %65, %66 : vector<16x1xf32>
    %68 = vector.broadcast %67 : vector<16x1xf32> to vector<16x16xf32>
    %69 = arith.subf %63, %68 : vector<16x16xf32>
    %70 = arith.mulf %69, %69 : vector<16x16xf32>
    %cst_44 = arith.constant dense<0.000000e+00> : vector<16xf32>
    %71 = vector.multi_reduction <add>, %70, %cst_44 [1] : vector<16x16xf32> to vector<16xf32>
    %72 = vector.shape_cast %71 : vector<16xf32> to vector<16x1xf32>
    %cst_45 = arith.constant 1.600000e+01 : f32
    %73 = vector.broadcast %cst_45 : f32 to vector<16x1xf32>
    %74 = arith.divf %72, %73 : vector<16x1xf32>
    %cst_46 = arith.constant 9.99999974E-6 : f32
    %75 = vector.broadcast %cst_46 : f32 to vector<16x1xf32>
    %76 = arith.addf %74, %75 : vector<16x1xf32>
    %77 = math.rsqrt %76 : vector<16x1xf32>
    %78 = vector.broadcast %77 : vector<16x1xf32> to vector<16x16xf32>
    %79 = arith.mulf %69, %78 : vector<16x16xf32>
    %c0_47 = arith.constant 0 : index
    %c0_48 = arith.constant 0 : index
    %80 = vector.load %arg14[%c0_47, %c0_48] : memref<1x16xf32, #tpu.memory_space<vmem>>, vector<1x16xf32>
    %81 = vector.broadcast %80 : vector<1x16xf32> to vector<16x16xf32>
    %82 = arith.mulf %79, %81 : vector<16x16xf32>
    %c0_49 = arith.constant 0 : index
    %c0_50 = arith.constant 0 : index
    %83 = vector.load %arg15[%c0_49, %c0_50] : memref<1x16xf32, #tpu.memory_space<vmem>>, vector<1x16xf32>
    %84 = vector.broadcast %83 : vector<1x16xf32> to vector<16x16xf32>
    %85 = arith.addf %82, %84 : vector<16x16xf32>
    %c0_51 = arith.constant 0 : index
    %c0_52 = arith.constant 0 : index
    %86 = vector.load %arg16[%c0_51, %c0_52] : memref<16x64xf32, #tpu.memory_space<vmem>>, vector<16x64xf32>
    %cst_53 = arith.constant dense<0.000000e+00> : vector<16x64xf32>
    %87 = tpu.matmul %85, %86, %cst_53 {dimension_numbers = #tpu.dot_dimension_numbers<[1], [0], [0], [1], [0, 0, 1, 1], [], []>} : vector<16x16xf32>, vector<16x64xf32>, vector<16x64xf32> -> vector<16x64xf32>
    %c0_54 = arith.constant 0 : index
    %c0_55 = arith.constant 0 : index
    %88 = vector.load %arg17[%c0_54, %c0_55] : memref<1x64xf32, #tpu.memory_space<vmem>>, vector<1x64xf32>
    %89 = vector.broadcast %88 : vector<1x64xf32> to vector<16x64xf32>
    %90 = arith.addf %87, %89 : vector<16x64xf32>
    %91 = arith.mulf %90, %90 : vector<16x64xf32>
    %92 = arith.mulf %90, %91 : vector<16x64xf32>
    %cst_56 = arith.constant 4.471500e-02 : f32
    %93 = vector.broadcast %cst_56 : f32 to vector<16x64xf32>
    %94 = arith.mulf %93, %92 : vector<16x64xf32>
    %95 = arith.addf %90, %94 : vector<16x64xf32>
    %cst_57 = arith.constant 0.797884583 : f32
    %96 = vector.broadcast %cst_57 : f32 to vector<16x64xf32>
    %97 = arith.mulf %96, %95 : vector<16x64xf32>
    %98 = math.tanh %97 : vector<16x64xf32>
    %cst_58 = arith.constant 1.000000e+00 : f32
    %99 = vector.broadcast %cst_58 : f32 to vector<16x64xf32>
    %100 = arith.addf %99, %98 : vector<16x64xf32>
    %cst_59 = arith.constant 5.000000e-01 : f32
    %101 = vector.broadcast %cst_59 : f32 to vector<16x64xf32>
    %102 = arith.mulf %101, %100 : vector<16x64xf32>
    %103 = arith.mulf %90, %102 : vector<16x64xf32>
    %c0_60 = arith.constant 0 : index
    %c0_61 = arith.constant 0 : index
    %104 = vector.load %arg18[%c0_60, %c0_61] : memref<64x16xf32, #tpu.memory_space<vmem>>, vector<64x16xf32>
    %cst_62 = arith.constant dense<0.000000e+00> : vector<16x16xf32>
    %105 = tpu.matmul %103, %104, %cst_62 {dimension_numbers = #tpu.dot_dimension_numbers<[1], [0], [0], [1], [0, 0, 1, 1], [], []>} : vector<16x64xf32>, vector<64x16xf32>, vector<16x16xf32> -> vector<16x16xf32>
    %c0_63 = arith.constant 0 : index
    %c0_64 = arith.constant 0 : index
    %106 = vector.load %arg19[%c0_63, %c0_64] : memref<1x16xf32, #tpu.memory_space<vmem>>, vector<1x16xf32>
    %107 = vector.broadcast %106 : vector<1x16xf32> to vector<16x16xf32>
    %108 = arith.addf %105, %107 : vector<16x16xf32>
    %109 = arith.addf %108, %63 : vector<16x16xf32>
    %c0_65 = arith.constant 0 : index
    %c0_66 = arith.constant 0 : index
    %c0_67 = arith.constant 0 : index
    %c0_68 = arith.constant 0 : index
    %110 = vector.load %arg20[%c0_65, %c0_66, %c0_67, %c0_68] : memref<1x4x16x16xf32, #tpu.memory_space<vmem>>, vector<1x1x16x16xf32>
    %111 = vector.shape_cast %110 : vector<1x1x16x16xf32> to vector<16x16xf32>
    %112 = vector.shape_cast %109 : vector<16x16xf32> to vector<1x1x16x16xf32>
    tpu.vector_store %arg20[%c0_65, %c0_66, %c0_67, %c0_68], %112 {strides = array<i32>} : memref<1x4x16x16xf32, #tpu.memory_space<vmem>>, vector<1x1x16x16xf32>,
    %c1 = arith.constant 1 : index
    %c0_69 = arith.constant 0 : index
    %c0_70 = arith.constant 0 : index
    %113 = vector.load %arg12[%c1, %c0_69, %c0_70] : memref<4x64x16xf32, #tpu.memory_space<vmem>>, vector<1x64x16xf32>
    %114 = vector.shape_cast %113 : vector<1x64x16xf32> to vector<64x16xf32>
    %cst_71 = arith.constant dense<0.000000e+00> : vector<16x16xf32>
    %115 = tpu.matmul %55, %114, %cst_71 {dimension_numbers = #tpu.dot_dimension_numbers<[1], [0], [0], [1], [0, 0, 1, 1], [], []>} : vector<16x64xf32>, vector<64x16xf32>, vector<16x16xf32> -> vector<16x16xf32>
    %c1_72 = arith.constant 1 : index
    %c0_73 = arith.constant 0 : index
    %c0_74 = arith.constant 0 : index
    %116 = vector.load %arg13[%c1_72, %c0_73, %c0_74] : memref<4x1x16xf32, #tpu.memory_space<vmem>>, vector<1x1x16xf32>
    %117 = vector.shape_cast %116 : vector<1x1x16xf32> to vector<1x16xf32>
    %118 = vector.broadcast %117 : vector<1x16xf32> to vector<16x16xf32>
    %119 = arith.addf %115, %118 : vector<16x16xf32>
    %120 = arith.addf %119, %5 : vector<16x16xf32>
    %cst_75 = arith.constant dense<0.000000e+00> : vector<16xf32>
    %121 = vector.multi_reduction <add>, %120, %cst_75 [1] : vector<16x16xf32> to vector<16xf32>
    %122 = vector.shape_cast %121 : vector<16xf32> to vector<16x1xf32>
    %cst_76 = arith.constant 1.600000e+01 : f32
    %123 = vector.broadcast %cst_76 : f32 to vector<16x1xf32>
    %124 = arith.divf %122, %123 : vector<16x1xf32>
    %125 = vector.broadcast %124 : vector<16x1xf32> to vector<16x16xf32>
    %126 = arith.subf %120, %125 : vector<16x16xf32>
    %127 = arith.mulf %126, %126 : vector<16x16xf32>
    %cst_77 = arith.constant dense<0.000000e+00> : vector<16xf32>
    %128 = vector.multi_reduction <add>, %127, %cst_77 [1] : vector<16x16xf32> to vector<16xf32>
    %129 = vector.shape_cast %128 : vector<16xf32> to vector<16x1xf32>
    %cst_78 = arith.constant 1.600000e+01 : f32
    %130 = vector.broadcast %cst_78 : f32 to vector<16x1xf32>
    %131 = arith.divf %129, %130 : vector<16x1xf32>
    %cst_79 = arith.constant 9.99999974E-6 : f32
    %132 = vector.broadcast %cst_79 : f32 to vector<16x1xf32>
    %133 = arith.addf %131, %132 : vector<16x1xf32>
    %134 = math.rsqrt %133 : vector<16x1xf32>
    %135 = vector.broadcast %134 : vector<16x1xf32> to vector<16x16xf32>
    %136 = arith.mulf %126, %135 : vector<16x16xf32>
    %c0_80 = arith.constant 0 : index
    %c0_81 = arith.constant 0 : index
    %137 = vector.load %arg14[%c0_80, %c0_81] : memref<1x16xf32, #tpu.memory_space<vmem>>, vector<1x16xf32>
    %138 = vector.broadcast %137 : vector<1x16xf32> to vector<16x16xf32>
    %139 = arith.mulf %136, %138 : vector<16x16xf32>
    %c0_82 = arith.constant 0 : index
    %c0_83 = arith.constant 0 : index
    %140 = vector.load %arg15[%c0_82, %c0_83] : memref<1x16xf32, #tpu.memory_space<vmem>>, vector<1x16xf32>
    %141 = vector.broadcast %140 : vector<1x16xf32> to vector<16x16xf32>
    %142 = arith.addf %139, %141 : vector<16x16xf32>
    %c0_84 = arith.constant 0 : index
    %c0_85 = arith.constant 0 : index
    %143 = vector.load %arg16[%c0_84, %c0_85] : memref<16x64xf32, #tpu.memory_space<vmem>>, vector<16x64xf32>
    %cst_86 = arith.constant dense<0.000000e+00> : vector<16x64xf32>
    %144 = tpu.matmul %142, %143, %cst_86 {dimension_numbers = #tpu.dot_dimension_numbers<[1], [0], [0], [1], [0, 0, 1, 1], [], []>} : vector<16x16xf32>, vector<16x64xf32>, vector<16x64xf32> -> vector<16x64xf32>
    %c0_87 = arith.constant 0 : index
    %c0_88 = arith.constant 0 : index
    %145 = vector.load %arg17[%c0_87, %c0_88] : memref<1x64xf32, #tpu.memory_space<vmem>>, vector<1x64xf32>
    %146 = vector.broadcast %145 : vector<1x64xf32> to vector<16x64xf32>
    %147 = arith.addf %144, %146 : vector<16x64xf32>
    %148 = arith.mulf %147, %147 : vector<16x64xf32>
    %149 = arith.mulf %147, %148 : vector<16x64xf32>
    %cst_89 = arith.constant 4.471500e-02 : f32
    %150 = vector.broadcast %cst_89 : f32 to vector<16x64xf32>
    %151 = arith.mulf %150, %149 : vector<16x64xf32>
    %152 = arith.addf %147, %151 : vector<16x64xf32>
    %cst_90 = arith.constant 0.797884583 : f32
    %153 = vector.broadcast %cst_90 : f32 to vector<16x64xf32>
    %154 = arith.mulf %153, %152 : vector<16x64xf32>
    %155 = math.tanh %154 : vector<16x64xf32>
    %cst_91 = arith.constant 1.000000e+00 : f32
    %156 = vector.broadcast %cst_91 : f32 to vector<16x64xf32>
    %157 = arith.addf %156, %155 : vector<16x64xf32>
    %cst_92 = arith.constant 5.000000e-01 : f32
    %158 = vector.broadcast %cst_92 : f32 to vector<16x64xf32>
    %159 = arith.mulf %158, %157 : vector<16x64xf32>
    %160 = arith.mulf %147, %159 : vector<16x64xf32>
    %c0_93 = arith.constant 0 : index
    %c0_94 = arith.constant 0 : index
    %161 = vector.load %arg18[%c0_93, %c0_94] : memref<64x16xf32, #tpu.memory_space<vmem>>, vector<64x16xf32>
    %cst_95 = arith.constant dense<0.000000e+00> : vector<16x16xf32>
    %162 = tpu.matmul %160, %161, %cst_95 {dimension_numbers = #tpu.dot_dimension_numbers<[1], [0], [0], [1], [0, 0, 1, 1], [], []>} : vector<16x64xf32>, vector<64x16xf32>, vector<16x16xf32> -> vector<16x16xf32>
    %c0_96 = arith.constant 0 : index
    %c0_97 = arith.constant 0 : index
    %163 = vector.load %arg19[%c0_96, %c0_97] : memref<1x16xf32, #tpu.memory_space<vmem>>, vector<1x16xf32>
    %164 = vector.broadcast %163 : vector<1x16xf32> to vector<16x16xf32>
    %165 = arith.addf %162, %164 : vector<16x16xf32>
    %166 = arith.addf %165, %120 : vector<16x16xf32>
    %c0_98 = arith.constant 0 : index
    %c1_99 = arith.constant 1 : index
    %c0_100 = arith.constant 0 : index
    %c0_101 = arith.constant 0 : index
    %167 = vector.load %arg20[%c0_98, %c1_99, %c0_100, %c0_101] : memref<1x4x16x16xf32, #tpu.memory_space<vmem>>, vector<1x1x16x16xf32>
    %168 = vector.shape_cast %167 : vector<1x1x16x16xf32> to vector<16x16xf32>
    %169 = vector.shape_cast %166 : vector<16x16xf32> to vector<1x1x16x16xf32>
    tpu.vector_store %arg20[%c0_98, %c1_99, %c0_100, %c0_101], %169 {strides = array<i32>} : memref<1x4x16x16xf32, #tpu.memory_space<vmem>>, vector<1x1x16x16xf32>,
    %c2 = arith.constant 2 : index
    %c0_102 = arith.constant 0 : index
    %c0_103 = arith.constant 0 : index
    %170 = vector.load %arg12[%c2, %c0_102, %c0_103] : memref<4x64x16xf32, #tpu.memory_space<vmem>>, vector<1x64x16xf32>
    %171 = vector.shape_cast %170 : vector<1x64x16xf32> to vector<64x16xf32>
    %cst_104 = arith.constant dense<0.000000e+00> : vector<16x16xf32>
    %172 = tpu.matmul %55, %171, %cst_104 {dimension_numbers = #tpu.dot_dimension_numbers<[1], [0], [0], [1], [0, 0, 1, 1], [], []>} : vector<16x64xf32>, vector<64x16xf32>, vector<16x16xf32> -> vector<16x16xf32>
    %c2_105 = arith.constant 2 : index
    %c0_106 = arith.constant 0 : index
    %c0_107 = arith.constant 0 : index
    %173 = vector.load %arg13[%c2_105, %c0_106, %c0_107] : memref<4x1x16xf32, #tpu.memory_space<vmem>>, vector<1x1x16xf32>
    %174 = vector.shape_cast %173 : vector<1x1x16xf32> to vector<1x16xf32>
    %175 = vector.broadcast %174 : vector<1x16xf32> to vector<16x16xf32>
    %176 = arith.addf %172, %175 : vector<16x16xf32>
    %177 = arith.addf %176, %5 : vector<16x16xf32>
    %cst_108 = arith.constant dense<0.000000e+00> : vector<16xf32>
    %178 = vector.multi_reduction <add>, %177, %cst_108 [1] : vector<16x16xf32> to vector<16xf32>
    %179 = vector.shape_cast %178 : vector<16xf32> to vector<16x1xf32>
    %cst_109 = arith.constant 1.600000e+01 : f32
    %180 = vector.broadcast %cst_109 : f32 to vector<16x1xf32>
    %181 = arith.divf %179, %180 : vector<16x1xf32>
    %182 = vector.broadcast %181 : vector<16x1xf32> to vector<16x16xf32>
    %183 = arith.subf %177, %182 : vector<16x16xf32>
    %184 = arith.mulf %183, %183 : vector<16x16xf32>
    %cst_110 = arith.constant dense<0.000000e+00> : vector<16xf32>
    %185 = vector.multi_reduction <add>, %184, %cst_110 [1] : vector<16x16xf32> to vector<16xf32>
    %186 = vector.shape_cast %185 : vector<16xf32> to vector<16x1xf32>
    %cst_111 = arith.constant 1.600000e+01 : f32
    %187 = vector.broadcast %cst_111 : f32 to vector<16x1xf32>
    %188 = arith.divf %186, %187 : vector<16x1xf32>
    %cst_112 = arith.constant 9.99999974E-6 : f32
    %189 = vector.broadcast %cst_112 : f32 to vector<16x1xf32>
    %190 = arith.addf %188, %189 : vector<16x1xf32>
    %191 = math.rsqrt %190 : vector<16x1xf32>
    %192 = vector.broadcast %191 : vector<16x1xf32> to vector<16x16xf32>
    %193 = arith.mulf %183, %192 : vector<16x16xf32>
    %c0_113 = arith.constant 0 : index
    %c0_114 = arith.constant 0 : index
    %194 = vector.load %arg14[%c0_113, %c0_114] : memref<1x16xf32, #tpu.memory_space<vmem>>, vector<1x16xf32>
    %195 = vector.broadcast %194 : vector<1x16xf32> to vector<16x16xf32>
    %196 = arith.mulf %193, %195 : vector<16x16xf32>
    %c0_115 = arith.constant 0 : index
    %c0_116 = arith.constant 0 : index
    %197 = vector.load %arg15[%c0_115, %c0_116] : memref<1x16xf32, #tpu.memory_space<vmem>>, vector<1x16xf32>
    %198 = vector.broadcast %197 : vector<1x16xf32> to vector<16x16xf32>
    %199 = arith.addf %196, %198 : vector<16x16xf32>
    %c0_117 = arith.constant 0 : index
    %c0_118 = arith.constant 0 : index
    %200 = vector.load %arg16[%c0_117, %c0_118] : memref<16x64xf32, #tpu.memory_space<vmem>>, vector<16x64xf32>
    %cst_119 = arith.constant dense<0.000000e+00> : vector<16x64xf32>
    %201 = tpu.matmul %199, %200, %cst_119 {dimension_numbers = #tpu.dot_dimension_numbers<[1], [0], [0], [1], [0, 0, 1, 1], [], []>} : vector<16x16xf32>, vector<16x64xf32>, vector<16x64xf32> -> vector<16x64xf32>
    %c0_120 = arith.constant 0 : index
    %c0_121 = arith.constant 0 : index
    %202 = vector.load %arg17[%c0_120, %c0_121] : memref<1x64xf32, #tpu.memory_space<vmem>>, vector<1x64xf32>
    %203 = vector.broadcast %202 : vector<1x64xf32> to vector<16x64xf32>
    %204 = arith.addf %201, %203 : vector<16x64xf32>
    %205 = arith.mulf %204, %204 : vector<16x64xf32>
    %206 = arith.mulf %204, %205 : vector<16x64xf32>
    %cst_122 = arith.constant 4.471500e-02 : f32
    %207 = vector.broadcast %cst_122 : f32 to vector<16x64xf32>
    %208 = arith.mulf %207, %206 : vector<16x64xf32>
    %209 = arith.addf %204, %208 : vector<16x64xf32>
    %cst_123 = arith.constant 0.797884583 : f32
    %210 = vector.broadcast %cst_123 : f32 to vector<16x64xf32>
    %211 = arith.mulf %210, %209 : vector<16x64xf32>
    %212 = math.tanh %211 : vector<16x64xf32>
    %cst_124 = arith.constant 1.000000e+00 : f32
    %213 = vector.broadcast %cst_124 : f32 to vector<16x64xf32>
    %214 = arith.addf %213, %212 : vector<16x64xf32>
    %cst_125 = arith.constant 5.000000e-01 : f32
    %215 = vector.broadcast %cst_125 : f32 to vector<16x64xf32>
    %216 = arith.mulf %215, %214 : vector<16x64xf32>
    %217 = arith.mulf %204, %216 : vector<16x64xf32>
    %c0_126 = arith.constant 0 : index
    %c0_127 = arith.constant 0 : index
    %218 = vector.load %arg18[%c0_126, %c0_127] : memref<64x16xf32, #tpu.memory_space<vmem>>, vector<64x16xf32>
    %cst_128 = arith.constant dense<0.000000e+00> : vector<16x16xf32>
    %219 = tpu.matmul %217, %218, %cst_128 {dimension_numbers = #tpu.dot_dimension_numbers<[1], [0], [0], [1], [0, 0, 1, 1], [], []>} : vector<16x64xf32>, vector<64x16xf32>, vector<16x16xf32> -> vector<16x16xf32>
    %c0_129 = arith.constant 0 : index
    %c0_130 = arith.constant 0 : index
    %220 = vector.load %arg19[%c0_129, %c0_130] : memref<1x16xf32, #tpu.memory_space<vmem>>, vector<1x16xf32>
    %221 = vector.broadcast %220 : vector<1x16xf32> to vector<16x16xf32>
    %222 = arith.addf %219, %221 : vector<16x16xf32>
    %223 = arith.addf %222, %177 : vector<16x16xf32>
    %c0_131 = arith.constant 0 : index
    %c2_132 = arith.constant 2 : index
    %c0_133 = arith.constant 0 : index
    %c0_134 = arith.constant 0 : index
    %224 = vector.load %arg20[%c0_131, %c2_132, %c0_133, %c0_134] : memref<1x4x16x16xf32, #tpu.memory_space<vmem>>, vector<1x1x16x16xf32>
    %225 = vector.shape_cast %224 : vector<1x1x16x16xf32> to vector<16x16xf32>
    %226 = vector.shape_cast %223 : vector<16x16xf32> to vector<1x1x16x16xf32>
    tpu.vector_store %arg20[%c0_131, %c2_132, %c0_133, %c0_134], %226 {strides = array<i32>} : memref<1x4x16x16xf32, #tpu.memory_space<vmem>>, vector<1x1x16x16xf32>,
    %c3 = arith.constant 3 : index
    %c0_135 = arith.constant 0 : index
    %c0_136 = arith.constant 0 : index
    %227 = vector.load %arg12[%c3, %c0_135, %c0_136] : memref<4x64x16xf32, #tpu.memory_space<vmem>>, vector<1x64x16xf32>
    %228 = vector.shape_cast %227 : vector<1x64x16xf32> to vector<64x16xf32>
    %cst_137 = arith.constant dense<0.000000e+00> : vector<16x16xf32>
    %229 = tpu.matmul %55, %228, %cst_137 {dimension_numbers = #tpu.dot_dimension_numbers<[1], [0], [0], [1], [0, 0, 1, 1], [], []>} : vector<16x64xf32>, vector<64x16xf32>, vector<16x16xf32> -> vector<16x16xf32>
    %c3_138 = arith.constant 3 : index
    %c0_139 = arith.constant 0 : index
    %c0_140 = arith.constant 0 : index
    %230 = vector.load %arg13[%c3_138, %c0_139, %c0_140] : memref<4x1x16xf32, #tpu.memory_space<vmem>>, vector<1x1x16xf32>
    %231 = vector.shape_cast %230 : vector<1x1x16xf32> to vector<1x16xf32>
    %232 = vector.broadcast %231 : vector<1x16xf32> to vector<16x16xf32>
    %233 = arith.addf %229, %232 : vector<16x16xf32>
    %234 = arith.addf %233, %5 : vector<16x16xf32>
    %cst_141 = arith.constant dense<0.000000e+00> : vector<16xf32>
    %235 = vector.multi_reduction <add>, %234, %cst_141 [1] : vector<16x16xf32> to vector<16xf32>
    %236 = vector.shape_cast %235 : vector<16xf32> to vector<16x1xf32>
    %cst_142 = arith.constant 1.600000e+01 : f32
    %237 = vector.broadcast %cst_142 : f32 to vector<16x1xf32>
    %238 = arith.divf %236, %237 : vector<16x1xf32>
    %239 = vector.broadcast %238 : vector<16x1xf32> to vector<16x16xf32>
    %240 = arith.subf %234, %239 : vector<16x16xf32>
    %241 = arith.mulf %240, %240 : vector<16x16xf32>
    %cst_143 = arith.constant dense<0.000000e+00> : vector<16xf32>
    %242 = vector.multi_reduction <add>, %241, %cst_143 [1] : vector<16x16xf32> to vector<16xf32>
    %243 = vector.shape_cast %242 : vector<16xf32> to vector<16x1xf32>
    %cst_144 = arith.constant 1.600000e+01 : f32
    %244 = vector.broadcast %cst_144 : f32 to vector<16x1xf32>
    %245 = arith.divf %243, %244 : vector<16x1xf32>
    %cst_145 = arith.constant 9.99999974E-6 : f32
    %246 = vector.broadcast %cst_145 : f32 to vector<16x1xf32>
    %247 = arith.addf %245, %246 : vector<16x1xf32>
    %248 = math.rsqrt %247 : vector<16x1xf32>
    %249 = vector.broadcast %248 : vector<16x1xf32> to vector<16x16xf32>
    %250 = arith.mulf %240, %249 : vector<16x16xf32>
    %c0_146 = arith.constant 0 : index
    %c0_147 = arith.constant 0 : index
    %251 = vector.load %arg14[%c0_146, %c0_147] : memref<1x16xf32, #tpu.memory_space<vmem>>, vector<1x16xf32>
    %252 = vector.broadcast %251 : vector<1x16xf32> to vector<16x16xf32>
    %253 = arith.mulf %250, %252 : vector<16x16xf32>
    %c0_148 = arith.constant 0 : index
    %c0_149 = arith.constant 0 : index
    %254 = vector.load %arg15[%c0_148, %c0_149] : memref<1x16xf32, #tpu.memory_space<vmem>>, vector<1x16xf32>
    %255 = vector.broadcast %254 : vector<1x16xf32> to vector<16x16xf32>
    %256 = arith.addf %253, %255 : vector<16x16xf32>
    %c0_150 = arith.constant 0 : index
    %c0_151 = arith.constant 0 : index
    %257 = vector.load %arg16[%c0_150, %c0_151] : memref<16x64xf32, #tpu.memory_space<vmem>>, vector<16x64xf32>
    %cst_152 = arith.constant dense<0.000000e+00> : vector<16x64xf32>
    %258 = tpu.matmul %256, %257, %cst_152 {dimension_numbers = #tpu.dot_dimension_numbers<[1], [0], [0], [1], [0, 0, 1, 1], [], []>} : vector<16x16xf32>, vector<16x64xf32>, vector<16x64xf32> -> vector<16x64xf32>
    %c0_153 = arith.constant 0 : index
    %c0_154 = arith.constant 0 : index
    %259 = vector.load %arg17[%c0_153, %c0_154] : memref<1x64xf32, #tpu.memory_space<vmem>>, vector<1x64xf32>
    %260 = vector.broadcast %259 : vector<1x64xf32> to vector<16x64xf32>
    %261 = arith.addf %258, %260 : vector<16x64xf32>
    %262 = arith.mulf %261, %261 : vector<16x64xf32>
    %263 = arith.mulf %261, %262 : vector<16x64xf32>
    %cst_155 = arith.constant 4.471500e-02 : f32
    %264 = vector.broadcast %cst_155 : f32 to vector<16x64xf32>
    %265 = arith.mulf %264, %263 : vector<16x64xf32>
    %266 = arith.addf %261, %265 : vector<16x64xf32>
    %cst_156 = arith.constant 0.797884583 : f32
    %267 = vector.broadcast %cst_156 : f32 to vector<16x64xf32>
    %268 = arith.mulf %267, %266 : vector<16x64xf32>
    %269 = math.tanh %268 : vector<16x64xf32>
    %cst_157 = arith.constant 1.000000e+00 : f32
    %270 = vector.broadcast %cst_157 : f32 to vector<16x64xf32>
    %271 = arith.addf %270, %269 : vector<16x64xf32>
    %cst_158 = arith.constant 5.000000e-01 : f32
    %272 = vector.broadcast %cst_158 : f32 to vector<16x64xf32>
    %273 = arith.mulf %272, %271 : vector<16x64xf32>
    %274 = arith.mulf %261, %273 : vector<16x64xf32>
    %c0_159 = arith.constant 0 : index
    %c0_160 = arith.constant 0 : index
    %275 = vector.load %arg18[%c0_159, %c0_160] : memref<64x16xf32, #tpu.memory_space<vmem>>, vector<64x16xf32>
    %cst_161 = arith.constant dense<0.000000e+00> : vector<16x16xf32>
    %276 = tpu.matmul %274, %275, %cst_161 {dimension_numbers = #tpu.dot_dimension_numbers<[1], [0], [0], [1], [0, 0, 1, 1], [], []>} : vector<16x64xf32>, vector<64x16xf32>, vector<16x16xf32> -> vector<16x16xf32>
    %c0_162 = arith.constant 0 : index
    %c0_163 = arith.constant 0 : index
    %277 = vector.load %arg19[%c0_162, %c0_163] : memref<1x16xf32, #tpu.memory_space<vmem>>, vector<1x16xf32>
    %278 = vector.broadcast %277 : vector<1x16xf32> to vector<16x16xf32>
    %279 = arith.addf %276, %278 : vector<16x16xf32>
    %280 = arith.addf %279, %234 : vector<16x16xf32>
    %c0_164 = arith.constant 0 : index
    %c3_165 = arith.constant 3 : index
    %c0_166 = arith.constant 0 : index
    %c0_167 = arith.constant 0 : index
    %281 = vector.load %arg20[%c0_164, %c3_165, %c0_166, %c0_167] : memref<1x4x16x16xf32, #tpu.memory_space<vmem>>, vector<1x1x16x16xf32>
    %282 = vector.shape_cast %281 : vector<1x1x16x16xf32> to vector<16x16xf32>
    %283 = vector.shape_cast %280 : vector<16x16xf32> to vector<1x1x16x16xf32>
    tpu.vector_store %arg20[%c0_164, %c3_165, %c0_166, %c0_167], %283 {strides = array<i32>} : memref<1x4x16x16xf32, #tpu.memory_space<vmem>>, vector<1x1x16x16xf32>,
    return
  }
  func.func @transform_0(%arg0: i32) -> (i32, i32, i32) {
    %c0_i32 = arith.constant 0 : i32
    %c0_i32_0 = arith.constant 0 : i32
    %c0_i32_1 = arith.constant 0 : i32
    return %arg0, %c0_i32, %c0_i32_0 : i32, i32, i32
  }
  func.func @transform_1(%arg0: i32) -> (i32, i32) {
    %c0_i32 = arith.constant 0 : i32
    %c0_i32_0 = arith.constant 0 : i32
    %c0_i32_1 = arith.constant 0 : i32
    return %c0_i32, %c0_i32_0 : i32, i32
  }
  func.func @transform_2(%arg0: i32) -> (i32, i32) {
    %c0_i32 = arith.constant 0 : i32
    %c0_i32_0 = arith.constant 0 : i32
    %c0_i32_1 = arith.constant 0 : i32
    return %c0_i32, %c0_i32_0 : i32, i32
  }
  func.func @transform_3(%arg0: i32) -> (i32, i32) {
    %c0_i32 = arith.constant 0 : i32
    %c0_i32_0 = arith.constant 0 : i32
    %c0_i32_1 = arith.constant 0 : i32
    return %c0_i32, %c0_i32_0 : i32, i32
  }
  func.func @transform_4(%arg0: i32) -> (i32, i32) {
    %c0_i32 = arith.constant 0 : i32
    %c0_i32_0 = arith.constant 0 : i32
    %c0_i32_1 = arith.constant 0 : i32
    return %c0_i32, %c0_i32_0 : i32, i32
  }
  func.func @transform_5(%arg0: i32) -> (i32, i32) {
    %c0_i32 = arith.constant 0 : i32
    %c0_i32_0 = arith.constant 0 : i32
    %c0_i32_1 = arith.constant 0 : i32
    return %c0_i32, %c0_i32_0 : i32, i32
  }
  func.func @transform_6(%arg0: i32) -> (i32, i32) {
    %c0_i32 = arith.constant 0 : i32
    %c0_i32_0 = arith.constant 0 : i32
    %c0_i32_1 = arith.constant 0 : i32
    return %c0_i32, %c0_i32_0 : i32, i32
  }
  func.func @transform_7(%arg0: i32) -> (i32, i32) {
    %c0_i32 = arith.constant 0 : i32
    %c0_i32_0 = arith.constant 0 : i32
    %c0_i32_1 = arith.constant 0 : i32
    return %c0_i32, %c0_i32_0 : i32, i32
  }
  func.func @transform_8(%arg0: i32) -> (i32, i32) {
    %c0_i32 = arith.constant 0 : i32
    %c0_i32_0 = arith.constant 0 : i32
    %c0_i32_1 = arith.constant 0 : i32
    return %c0_i32, %c0_i32_0 : i32, i32
  }
  func.func @transform_9(%arg0: i32) -> (i32, i32) {
    %c0_i32 = arith.constant 0 : i32
    %c0_i32_0 = arith.constant 0 : i32
    %c0_i32_1 = arith.constant 0 : i32
    return %c0_i32, %c0_i32_0 : i32, i32
  }
  func.func @transform_10(%arg0: i32) -> (i32, i32) {
    %c0_i32 = arith.constant 0 : i32
    %c0_i32_0 = arith.constant 0 : i32
    %c0_i32_1 = arith.constant 0 : i32
    return %c0_i32, %c0_i32_0 : i32, i32
  }
  func.func @transform_11(%arg0: i32) -> (i32, i32, i32) {
    %c0_i32 = arith.constant 0 : i32
    %c0_i32_0 = arith.constant 0 : i32
    %c0_i32_1 = arith.constant 0 : i32
    %c0_i32_2 = arith.constant 0 : i32
    return %c0_i32, %c0_i32_0, %c0_i32_1 : i32, i32, i32
  }
  func.func @transform_12(%arg0: i32) -> (i32, i32, i32) {
    %c0_i32 = arith.constant 0 : i32
    %c0_i32_0 = arith.constant 0 : i32
    %c0_i32_1 = arith.constant 0 : i32
    %c0_i32_2 = arith.constant 0 : i32
    return %c0_i32, %c0_i32_0, %c0_i32_1 : i32, i32, i32
  }
  func.func @transform_13(%arg0: i32) -> (i32, i32) {
    %c0_i32 = arith.constant 0 : i32
    %c0_i32_0 = arith.constant 0 : i32
    %c0_i32_1 = arith.constant 0 : i32
    return %c0_i32, %c0_i32_0 : i32, i32
  }
  func.func @transform_14(%arg0: i32) -> (i32, i32) {
    %c0_i32 = arith.constant 0 : i32
    %c0_i32_0 = arith.constant 0 : i32
    %c0_i32_1 = arith.constant 0 : i32
    return %c0_i32, %c0_i32_0 : i32, i32
  }
  func.func @transform_15(%arg0: i32) -> (i32, i32) {
    %c0_i32 = arith.constant 0 : i32
    %c0_i32_0 = arith.constant 0 : i32
    %c0_i32_1 = arith.constant 0 : i32
    return %c0_i32, %c0_i32_0 : i32, i32
  }
  func.func @transform_16(%arg0: i32) -> (i32, i32) {
    %c0_i32 = arith.constant 0 : i32
    %c0_i32_0 = arith.constant 0 : i32
    %c0_i32_1 = arith.constant 0 : i32
    return %c0_i32, %c0_i32_0 : i32, i32
  }
  func.func @transform_17(%arg0: i32) -> (i32, i32) {
    %c0_i32 = arith.constant 0 : i32
    %c0_i32_0 = arith.constant 0 : i32
    %c0_i32_1 = arith.constant 0 : i32
    return %c0_i32, %c0_i32_0 : i32, i32
  }
  func.func @transform_18(%arg0: i32) -> (i32, i32) {
    %c0_i32 = arith.constant 0 : i32
    %c0_i32_0 = arith.constant 0 : i32
    %c0_i32_1 = arith.constant 0 : i32
    return %c0_i32, %c0_i32_0 : i32, i32
  }
  func.func @transform_19(%arg0: i32) -> (i32, i32, i32, i32) {
    %c0_i32 = arith.constant 0 : i32
    %c0_i32_0 = arith.constant 0 : i32
    %c0_i32_1 = arith.constant 0 : i32
    %c0_i32_2 = arith.constant 0 : i32
    return %arg0, %c0_i32, %c0_i32_0, %c0_i32_1 : i32, i32, i32, i32
  }
}

</mosaic_0001>

<bundles_post_ra>
// kernel: tpu_custom_call.1
= control target key start
LH: loop header
LB: loop body
LE: loop exit
PB: predicated region body
PF: predicated region fallthrough
CT: control target
= control target key end

     0   :  { %s3993_s0 = inlined_call_operand.vmem [shape: bf16[2,16,64], index: 0, kind: input, shape index: {}]   ;;  %s3994_s1 = inlined_call_operand.vmem [shape: bf16[64,16], index: 1, kind: input, shape index: {}]   ;;  %s3995_s2 = inlined_call_operand.vmem [shape: f32[16,16], index: 2, kind: input, shape index: {}]   ;;  %s3996_s3 = inlined_call_operand.vmem [shape: f32[1,16], index: 3, kind: input, shape index: {}]   ;;  %s3997_s4 = inlined_call_operand.vmem [shape: f32[1,16], index: 4, kind: input, shape index: {}]   ;;  %s3998_s5 = inlined_call_operand.vmem [shape: f32[16,64], index: 5, kind: input, shape index: {}]   ;;  %s3999_s6 = inlined_call_operand.vmem [shape: f32[1,64], index: 6, kind: input, shape index: {}]   ;;  %s4000_s7 = inlined_call_operand.vmem [shape: f32[16,64], index: 7, kind: input, shape index: {}]   ;;  %s4001_s8 = inlined_call_operand.vmem [shape: f32[1,64], index: 8, kind: input, shape index: {}]   ;;  %s4002_s9 = inlined_call_operand.vmem [shape: f32[16,64], index: 9, kind: input, shape index: {}]   ;;  %s4003_s10 = inlined_call_operand.vmem [shape: f32[1,64], index: 10, kind: input, shape index: {}]   ;;  %s4004_s11 = inlined_call_operand.vmem [shape: f32[4,64,16], index: 11, kind: input, shape index: {}]   ;;  %s4005_s12 = inlined_call_operand.vmem [shape: f32[4,1,16], index: 12, kind: input, shape index: {}]   ;;  %s4006_s13 = inlined_call_operand.vmem [shape: f32[1,16], index: 13, kind: input, shape index: {}]   ;;  %s4007_s14 = inlined_call_operand.vmem [shape: f32[1,16], index: 14, kind: input, shape index: {}]   ;;  %s4008_s15 = inlined_call_operand.vmem [shape: f32[16,64], index: 15, kind: input, shape index: {}]   ;;  %s4009_s16 = inlined_call_operand.vmem [shape: f32[1,64], index: 16, kind: input, shape index: {}]   ;;  %s4010_s17 = inlined_call_operand.vmem [shape: f32[64,16], index: 17, kind: input, shape index: {}]   ;;  %s4011_s18 = inlined_call_operand.vmem [shape: f32[1,16], index: 18, kind: input, shape index: {}]   ;;  %s4012_s19 = inlined_call_operand.hbm [shape: f32[2,4,16,16], index: 19, kind: output, shape index: {}]  }
   0x1   :  { %4021 = sst [smem:[#allocation11_spill]] %s3993_s0 }
   0x2   :  { %4022 = sst [smem:[#allocation12_spill]] %s3994_s1 }
   0x3   :  { %4023 = sst [smem:[#allocation13_spill]] %s3995_s2 }
   0x4   :  { %4024 = sst [smem:[#allocation14_spill]] %s3996_s3 }
   0x5   :  { %4025 = sst [smem:[#allocation15_spill]] %s3997_s4 }
   0x6   :  { %4026 = sst [smem:[#allocation16_spill]] %s3998_s5 }
   0x7   :  { %24 = vsyncpa [#allocation3], 0 }
   0x8   :  { %26 = vsyncpa [#allocation3 + $0x1], 0  ;;  %s3372_s0 = smov 0   ;;  %s3374_s30 = smov 0  }
   0x9   :  { %s3376_s20 = smov 0   ;;  %s3378_s21 = smov 0  }
   0xa LB: > { %4027 = sst [smem:[#allocation5_spill]] %s3253_s0  ;;  %s3393_s1 = sadd.s32 4294967295, %s3265_s21   ;;  %s3265_s21 = sphi %s3378_s21, %s4044_s21   ;;  %s3261_s20 = sphi %s3376_s20, %s4046_s20   ;;  %s3257_s30 = sphi %s3374_s30, %s4048_s30   ;;  %s3253_s0 = sphi %s3372_s0, %s4047_s0  }
   0xb   : > { %4028 = sst [smem:[#allocation6_spill]] %s3261_s20  ;;  %s2651_s22 = sadd.s32 4294967294, %s3265_s21  }
   0xc   : > { %4029 = sst [smem:[#allocation7_spill]] %s3265_s21  ;;  %s3397_s2 = sadd.s32 1, %s3265_s21  }
   0xd   : > { %4030 = sst [smem:[#allocation8_spill]] %s3397_s2  ;;  %s443_s23 = sadd.s32 1, %s3261_s20 }
   0xe   : > { %s440_s24 = ssub.s32 %s3265_s21, %s3397_s2  ;;  %p453_p0 = scmp.ne.s32.totalorder %s3261_s20, %s3257_s30 }
   0xf   : > { %p441_p1 = scmp.eq.s32.totalorder %s440_s24, 0  ;;  %p454_p2 = scmp.eq.s32.totalorder %s3393_s1, 1 }
  0x10   : > { %p459_p3 = scmp.ne.s32.totalorder %s3257_s30, %s3253_s0  ;;  %p460_p4 = scmp.eq.s32.totalorder %s2651_s22, 1 }
  0x11   : > { %s3408_s25 = scalar_select %p441_p1, %s3261_s20, %s443_s23  }
  0x12   : > { %p3410_p5 = por %p454_p2, %p453_p0  ;;  %p3414_p6 = por %p460_p4, %p459_p3 }
  0x13   : > { %4031 = sst [smem:[#allocation9_spill]] %s3408_s25  ;;  %p2654_p7 = scmp.ge.s32.totalorder %s3265_s21, 1 }
  0x14   : > { %s4033_s26 = scalar_select %p3414_p6, 1, 0 }
  0x15   : > { %p540_p8 = scmp.lt.s32.totalorder %s3265_s21, 3 }
  0x16   : > { %4034 = sst [smem:[#allocation10_spill]] %s4033_s26 }
  0x17   : > { %p541_p9 = pnand %p2654_p7, %p540_p8 }
  0x18   : > { %s4035_s29 = sld [smem:[#allocation12_spill]] (!%p541_p9)  ;;  %p596_p10 = scmp.lt.s32.totalorder (!%p541_p9), %s3393_s1, 1 }
  0x19   : > { %544 = sbr.rel (%p541_p9) target bundleno = 3112 (0xc28), region = 96  ;;  %s4036_s26 = sld [smem:[#allocation11_spill]] (!%p541_p9) }
  0x1a   : > { %s4037_s25 = sld [smem:[#allocation13_spill]] (!%p541_p9)  ;;  %s593_s21 = sand.u32 (!%p541_p9), 1, %s3257_s30  }
  0x1b   : > { %s4038_s5 = sld [smem:[#allocation16_spill]] (!%p541_p9)  ;;  %s2655_s28 = sshll.u32 (!%p541_p9), %s593_s21, 6 }
  0x1c   : > { %s4039_s2 = sld [smem:[#allocation14_spill]] (!%p541_p9)  ;;  %s3860_s22 = scalar_lea.vmem (!%p541_p9), [#allocation2], %s2655_s28 }
  0x1d   : > { %s4040_s4 = sld [smem:[#allocation15_spill]] (!%p541_p9)  ;;  %s2764_s23 = sshll.u32 (!%p541_p9), %s3393_s1, 10 }
  0x1e   : > { %v3156_v0 = vld [vmem:[%s4035_s29 + $0x18] sm:$0xff]   ;;  %v3267_v1 = vmov 0.0   ;;  %v3157_v2 = vld [vmem:[%s4035_s29 + $0x10] sm:$0xff]   ;;  %vm3268_vm0 = vmmov 0   ;;  %s597_s24 = scalar_select %p596_p10, %s3393_s1, 1  ;;  %v3158_v3 = vld [vmem:[%s4035_s29 + $0x8] sm:$0xff]  }
  0x1f   : > { %2886 = vmatprep.subr.bf16.mxu0 %v3267_v1  ;;  %2894 = vmatprep.mubr.msk.bf16.mxu0 %vm3268_vm0, %v3267_v1  ;;  %v3159_v4 = vld [vmem:[%s4035_s29] sm:$0xff]   ;;  %vm643_vm1 = vcmask 523264   ;;  %vm688_vm2 = vcmask 130048   ;;  %v825_v28 = vld [vmem:[%s4000_s7 + $0x8] sm:$0xff]  ;;  %s2589_s20 = sshll.u32 %s3860_s22, 4  ;;  %s3953_s1 = scalar_lea.sflag [#allocation3], %s593_s21  ;;  %s3944_s20 = int_to_ptr.vmem [resolvable:$true] %s2589_s20 }
  0x20   : > { %2887 = vmatpush3.bf16.msra.mxu0 %v3156_v0  ;;  %s2763_s27 = sshll.u32 %s597_s24, 3  ;;  %v612_v6 = vld [vmem:[%s4037_s25] sm:$0xff]  ;;  %v613_v10 = vld [vmem:[%s4037_s25 + $0x8] sm:$0xff]  ;;  %s3205_s24 = scalar_lea.vmem %s3944_s20, 1024 }
  0x21   : > { %2888 = vmatprep.subr.bf16.mxu0 %v3267_v1  ;;  %s600_s0 = scalar_lea.vmem %s4036_s26, %s2763_s27  ;;  %v735_v26 = vld [vmem:[%s4038_s5 + $0x8] sm:$0xff]  ;;  %v734_v27 = vld [vmem:[%s4038_s5] sm:$0xff]  ;;  %p3206_p11 = scmp.ne.s32.totalorder %s3944_s20, %s3205_s24 }
  0x22   : > { %v3160_v5 = vld [vmem:[%s600_s0] sm:$0xff]   ;;  %2898 = vmatprep.subr.mxu1 %v735_v26  ;;  %v909_v46 = vld [vmem:[%s4002_s9 + $0x8] sm:$0xff]  ;;  %s3942_s0 = scalar_lea.hbm %s4012_s19, %s2764_s23  ;;  %s3269_s27 = smov [#allocation2]  }
  0x23   : > { %2899 = vmatpush3.msra.mxu1 %v735_v26  ;;  %v2664_v36 = vld [vmem:[%s4039_s2] ss:$0 sm:$0xff]  ;;  %p3207_p12 = pnand %p3206_p11, %p3410_p5  ;;  %s3209_s28 = sshll.u32 %s3269_s27, 4  ;;  %s3210_s28 = int_to_ptr.vmem [resolvable:$false] %s3209_s28 }
  0x24   : > { %2889 = vmatpush3.bf16.msra.mxu0 %v3157_v2  ;;  %2900 = vmatprep.subr.mxu1 %v734_v27  ;;  %v2665_v38 = vld [vmem:[%s4040_s4] ss:$0 sm:$0xff]  ;;  %s3211_s23 = scalar_lea.vmem %s3210_s28, 2048  ;;  %p3212_p0 = scmp.lt.s32.totalorder %s3944_s20, %s3210_s28 }
  0x25   : > { %2890 = vmatprep.subr.bf16.mxu0 %v3267_v1  ;;  %2901 = vmatpush3.msra.mxu1 %v734_v27  ;;  %v824_v45 = vld [vmem:[%s4000_s7] sm:$0xff]  ;;  %p3208_p13 = pneg %p3207_p12  ;;  %p3213_p1 = scmp.lt.s32.totalorder %s3211_s23, %s3205_s24 }
  0x26   : > { %2905 = vmatprep.subr.mxu1 %v825_v28  ;;  %v908_v47 = vld [vmem:[%s4002_s9] sm:$0xff] }
  0x27   : > { %v2666_v49 = vld [vmem:[%s3999_s6] ss:$0 sm:$0xff]  ;;  %p3214_p2 = por %p3213_p1, %p3212_p0 }
  0x28   : > { %2891 = vmatpush3.bf16.msra.mxu0 %v3158_v3  ;;  %v2669_v51 = vld [vmem:[%s4001_s8] ss:$0 sm:$0xff] }
  0x29   : > { %2892 = vmatprep.subr.bf16.mxu0 %v3267_v1  ;;  %v2672_v58 = vld [vmem:[%s4003_s10] ss:$0 sm:$0xff]  ;;  %p3215_p3 = pnand %p3214_p2, %p3208_p13 }
  0x2c   : > { %2893 = vmatpush3.bf16.msra.mxu0 %v3159_v4 }
  0x2f   : > { %2895 = vmatmul.mubr.msk.bf16.vlgmr.msra.gmra.mxu0 %vm643_vm1, %v3160_v5 }
  0xef   : > { %v681_v7 = vpop.f32.mrf.mxu0 }
  0xf0   : > { %v3441_v8 = vadd.f32 %v681_v7, %v612_v6 }
  0xf1   : > { %v2896_v9 = vpop.f32.mrf.mxu0 }
  0xf2   : > { %v689_v11 = vsel %vm688_vm2, %v3441_v8, 0.0 }
  0xf3   : > { %690 = vadd.xlane.f32.xlu0 %v689_v11  ;;  %v684_v12 = vpop.f32.mrf.mxu0 }
  0xf4   : > { %v3448_v13 = vadd.f32 %v684_v12, %v613_v10 }
  0xf5   : > { %v2897_v14 = vpop.f32.mrf.mxu0 }
  0xf6   : > { %v692_v15 = vsel %vm688_vm2, %v3448_v13, 0.0 }
  0xf7   : > { %693 = vadd.xlane.f32.xlu0 %v692_v15 }
 0x17c   : > { %v691_v16 = vpop.xlane.xlu0 %690 }
 0x17d   : > { %v696_v17 = vmul.f32 0.0625, %v691_v16 }
 0x17f   : > { %v698_v18 = vsub.f32 %v3441_v8, %v696_v17  ;;  %v1191_v17 = vld [vmem:[%s4004_s11 + $0x38] sm:$0xff] }
 0x180   : > { %v694_v19 = vpop.xlane.xlu0 %693 }
 0x181   : > { %v697_v20 = vmul.f32 0.0625, %v694_v19  ;;  %v700_v21 = vmul.f32 %v698_v18, %v698_v18  ;;  %v1189_v19 = vld [vmem:[%s4004_s11 + $0x28] sm:$0xff] }
 0x183   : > { %v699_v22 = vsub.f32 %v3448_v13, %v697_v20  ;;  %v702_v23 = vsel %vm688_vm2, %v700_v21, 0.0  ;;  %v1188_v20 = vld [vmem:[%s4004_s11 + $0x20] sm:$0xff]  ;;  %v1187_v21 = vld [vmem:[%s4004_s11 + $0x18] sm:$0xff] }
 0x184   : > { %703 = vadd.xlane.f32.xlu1 %v702_v23  ;;  %v1185_v23 = vld [vmem:[%s4004_s11 + $0x8] sm:$0xff] }
 0x185   : > { %v701_v24 = vmul.f32 %v699_v22, %v699_v22 }
 0x187   : > { %v705_v25 = vsel %vm688_vm2, %v701_v24, 0.0 }
 0x188   : > { %706 = vadd.xlane.f32.xlu1 %v705_v25 }
 0x20d   : > { %v704_v29 = vpop.xlane.xlu1 %703 }
 0x20e   : > { %v708_v30 = vmul.f32 0.0625, %v704_v29 }
 0x210   : > { %v710_v31 = vadd.f32 1e-05, %v708_v30  ;;  %v1184_v30 = vld [vmem:[%s4004_s11] sm:$0xff] }
 0x211   : > { %v707_v32 = vpop.xlane.xlu1 %706 }
 0x212   : > { %3161 = vrsqrt.f32 %v710_v31  ;;  %v709_v33 = vmul.f32 0.0625, %v707_v32  ;;  %v2699_v31 = vld [vmem:[%s4004_s11 + $0x78] sm:$0xff] }
 0x214   : > { %v711_v34 = vadd.f32 1e-05, %v709_v33 }
 0x216   : > { %3163 = vrsqrt.f32 %v711_v34  ;;  %v2698_v34 = vld [vmem:[%s4004_s11 + $0x70] sm:$0xff] }
 0x21f   : > { %v3162_v35 = vpop.eup %3161 }
 0x220   : > { %v714_v37 = vmul.f32 %v3162_v35, %v698_v18  ;;  %v1190_v18 = vld [vmem:[%s4004_s11 + $0x30] sm:$0xff]  ;;  %v2697_v35 = vld [vmem:[%s4004_s11 + $0x68] sm:$0xff] }
 0x222   : > { %v723_v39 = vmul.f32 %v2664_v36, %v714_v37  ;;  %v2695_v37 = vld [vmem:[%s4004_s11 + $0x58] sm:$0xff] }
 0x223   : > { %v3164_v40 = vpop.eup %3163 }
 0x224   : > { %v715_v41 = vmul.f32 %v3164_v40, %v699_v22  ;;  %v732_v42 = vadd.f32 %v2665_v38, %v723_v39  ;;  %v1186_v22 = vld [vmem:[%s4004_s11 + $0x10] sm:$0xff]  ;;  %v2693_v39 = vld [vmem:[%s4004_s11 + $0x48] sm:$0xff]  ;;  %v2692_v40 = vld [vmem:[%s4004_s11 + $0x40] sm:$0xff] }
 0x226   : > { %v724_v43 = vmul.f32 %v2664_v36, %v715_v41  ;;  %2902 = vmatprep.mubr.msk.f32.mxu1 %vm688_vm2, %v732_v42  ;;  %v2696_v36 = vld [vmem:[%s4004_s11 + $0x60] sm:$0xff]  ;;  %v2721_v41 = vld [vmem:[%s4004_s11 + $0xb8] sm:$0xff] }
 0x228   : > { %v733_v44 = vadd.f32 %v2665_v38, %v724_v43  ;;  %v2694_v38 = vld [vmem:[%s4004_s11 + $0x50] sm:$0xff]  ;;  %v2719_v43 = vld [vmem:[%s4004_s11 + $0xa8] sm:$0xff] }
 0x22a   : > { %2903 = vmatmul.mubr.msk.f32.vlgmr.msra.gmra.mxu1 %vm688_vm2, %v733_v44 }
 0x22b   : > { %2906 = vmatpush3.msra.mxu1 %v825_v28  ;;  %2909 = vmatprep.mubr.msk.f32.mxu1 %vm688_vm2, %v732_v42 }
 0x22c   : > { %2907 = vmatprep.subr.mxu1 %v824_v45 }
 0x22d   : > { %2908 = vmatpush3.msra.mxu1 %v824_v45  ;;  %v2717_v45 = vld [vmem:[%s4004_s11 + $0x98] sm:$0xff] }
 0x22e   : > { %2910 = vmatmul.mubr.msk.f32.vlgmr.msra.gmra.mxu1 %vm688_vm2, %v733_v44  ;;  %2912 = vmatprep.subr.mxu1 %v909_v46 }
 0x22f   : > { %2913 = vmatpush3.msra.mxu1 %v909_v46  ;;  %2916 = vmatprep.mubr.msk.f32.mxu1 %vm688_vm2, %v732_v42  ;;  %v2720_v42 = vld [vmem:[%s4004_s11 + $0xb0] sm:$0xff] }
 0x230   : > { %2914 = vmatprep.subr.mxu1 %v908_v47  ;;  %v2716_v46 = vld [vmem:[%s4004_s11 + $0x90] sm:$0xff] }
 0x231   : > { %2915 = vmatpush3.msra.mxu1 %v908_v47  ;;  %v2715_v47 = vld [vmem:[%s4004_s11 + $0x88] sm:$0xff] }
 0x232   : > { %2917 = vmatmul.mubr.msk.f32.vlgmr.msra.gmra.mxu1 %vm688_vm2, %v733_v44  ;;  %2933 = vmatprep.subr.mxu1 %v1191_v17  ;;  %v2718_v44 = vld [vmem:[%s4004_s11 + $0xa0] sm:$0xff] }
 0x233   : > { %2934 = vmatpush3.msra.mxu1 %v1191_v17 }
 0x234   : > { %2935 = vmatprep.subr.mxu1 %v1190_v18 }
 0x235   : > { %2936 = vmatpush3.msra.mxu1 %v1190_v18 }
 0x236   : > { %2937 = vmatprep.subr.mxu1 %v1189_v19 }
 0x237   : > { %2938 = vmatpush3.msra.mxu1 %v1189_v19 }
 0x238   : > { %2939 = vmatprep.subr.mxu1 %v1188_v20 }
 0x239   : > { %2940 = vmatpush3.msra.mxu1 %v1188_v20 }
 0x23a   : > { %2941 = vmatprep.subr.mxu1 %v1187_v21 }
 0x23b   : > { %2942 = vmatpush3.msra.mxu1 %v1187_v21 }
 0x23c   : > { %2943 = vmatprep.subr.mxu1 %v1186_v22 }
 0x23d   : > { %2944 = vmatpush3.msra.mxu1 %v1186_v22 }
 0x23e   : > { %2945 = vmatprep.subr.mxu1 %v1185_v23 }
 0x23f   : > { %2946 = vmatpush3.msra.mxu1 %v1185_v23  ;;  %v3650_v23 = vld [vmem:[%s4008_s15 + $0x8] sm:$0xff] }
 0x240   : > { %2947 = vmatprep.subr.mxu1 %v1184_v30 }
 0x241   : > { %2948 = vmatpush3.msra.mxu1 %v1184_v30 }
 0x242   : > { %2978 = vmatprep.subr.mxu1 %v2699_v31 }
 0x2ea   : > { %v2904_v48 = vpop.f32.mrf.mxu1 }
 0x2eb   : > { %v821_v61 = vadd.f32 %v2904_v48, %v2666_v49  ;;  %v2714_v48 = vld [vmem:[%s4004_s11 + $0x80] sm:$0xff] }
 0x2ec   : > { %v815_v50 = vpop.f32.mrf.mxu1 }
 0x2ed   : > { %v816_v52 = vadd.f32 %v2666_v49, %v815_v50  ;;  %v2743_v49 = vld [vmem:[%s4004_s11 + $0xf8] sm:$0xff]  ;;  %v2742_v50 = vld [vmem:[%s4004_s11 + $0xf0] sm:$0xff] }
 0x2ee   : > { %v2911_v53 = vpop.f32.mrf.mxu1 }
 0x2ef   : > { %v905_v54 = vadd.f32 %v2911_v53, %v2669_v51  ;;  %2923 = vmatprep.mubr.msk.f32.mxu0 %vm643_vm1, %v816_v52  ;;  %v2740_v52 = vld [vmem:[%s4004_s11 + $0xe0] sm:$0xff]  ;;  %v2739_v53 = vld [vmem:[%s4004_s11 + $0xd8] sm:$0xff] }
 0x2f0   : > { %v899_v55 = vpop.f32.mrf.mxu1 }
 0x2f1   : > { %v900_v56 = vadd.f32 %v2669_v51, %v899_v55  ;;  %2919 = vmatprep.subr.msk.mxu0 %vm643_vm1, %v905_v54  ;;  %v2741_v51 = vld [vmem:[%s4004_s11 + $0xe8] sm:$0xff] }
 0x2f2   : > { %v2918_v57 = vpop.f32.mrf.mxu1  ;;  %2920 = vmatpush3.xpose.msk.msra.mxu0 %vm643_vm1, %v905_v54  ;;  %v2738_v54 = vld [vmem:[%s4004_s11 + $0xd0] sm:$0xff]  ;;  %v2737_v55 = vld [vmem:[%s4004_s11 + $0xc8] sm:$0xff] }
 0x2f3   : > { %2921 = vmatprep.subr.msk.mxu0 %vm643_vm1, %v900_v56  ;;  %v989_v59 = vadd.f32 %v2918_v57, %v2672_v58  ;;  %v2681_v57 = vld [vmem:[%s4005_s12] ss:$0 sm:$0xff] }
 0x2f4   : > { %v983_v60 = vpop.f32.mrf.mxu1 }
 0x2f5   : > { %v984_v62 = vadd.f32 %v2672_v58, %v983_v60 }
 0x2f6   : > { %2922 = vmatpush3.xpose.msk.msra.mxu0 %vm643_vm1, %v900_v56  ;;  %v2736_v56 = vld [vmem:[%s4004_s11 + $0xc0] sm:$0xff] }
 0x2f7   : > { %2926 = vmatprep.subr.mxu0 %v989_v59 }
 0x2f9   : > { %2924 = vmatmul.mubr.msk.f32.vlgmr.msra.gmra.mxu0 %vm643_vm1, %v821_v61 }
 0x2fa   : > { %2927 = vmatpush3.msra.mxu0 %v989_v59 }
 0x2fb   : > { %2928 = vmatprep.subr.mxu0 %v984_v62 }
 0x2fc   : > { %2929 = vmatpush3.msra.mxu0 %v984_v62 }
 0x2fd   : > { %2952 = vmatprep.subr.mxu0 %v3650_v23 }
 0x3b9   : > { %v2925_v63 = vpop.f32.mrf.mxu0 }
 0x3ba   : > { %v1080_v0 = vmul.f32 0.125, %v2925_v63 }
 0x3bb   : > { %v1070_v1 = vpop.f32.mrf.mxu0 }
 0x3bc   : > { %v1079_v2 = vmul.f32 0.125, %v1070_v1  ;;  %v1084_v3 = vsel %vm688_vm2, %v1080_v0, -inf }
 0x3bd   : > { %1085 = vmax.xlane.f32.xlu1 %v1084_v3  ;;  %v2701_v3 = vld [vmem:[%s4005_s12 + $0x1] ss:$0 sm:$0xff] }
 0x3be   : > { %v1081_v4 = vsel %vm688_vm2, %v1079_v2, -inf }
 0x3bf   : > { %1082 = vmax.xlane.f32.xlu0 %v1081_v4 }
 0x446   : > { %v1086_v5 = vpop.xlane.xlu1 %1085 }
 0x447   : > { %v1088_v6 = vsub.f32 %v1080_v0, %v1086_v5 }
 0x448   : > { %v1083_v7 = vpop.xlane.xlu0 %1082 }
 0x449   : > { %v1091_v9 = vmul.f32 1.442695, %v1088_v6  ;;  %v1087_v10 = vsub.f32 %v1079_v2, %v1083_v7 }
 0x44b   : > { %3165 = vpow2.f32 %v1091_v9  ;;  %v1089_v11 = vmul.f32 1.442695, %v1087_v10 }
 0x44d   : > { %3167 = vpow2.f32 %v1089_v11 }
 0x458   : > { %v3166_v12 = vpop.eup %3165 }
 0x459   : > { %v1096_v14 = vsel %vm688_vm2, %v3166_v12, 0.0 }
 0x45a   : > { %v3168_v15 = vpop.eup %3167  ;;  %1097 = vadd.xlane.f32.xlu1 %v1096_v14 }
 0x45b   : > { %v1093_v16 = vsel %vm688_vm2, %v3168_v15, 0.0 }
 0x45c   : > { %1094 = vadd.xlane.f32.xlu0 %v1093_v16 }
 0x4e3   : > { %v1098_v24 = vpop.xlane.xlu1 %1097 }
 0x4e4   : > { %3169 = vrcp.f32 %v1098_v24  ;;  %v3655_v24 = vld [vmem:[%s4008_s15] sm:$0xff] }
 0x4e5   : > { %v1095_v25 = vpop.xlane.xlu0 %1094 }
 0x4e6   : > { %3171 = vrcp.f32 %v1095_v25 }
 0x4f1   : > { %v3170_v26 = vpop.eup %3169 }
 0x4f2   : > { %v1102_v29 = vmul.f32 %v3170_v26, %v3166_v12 }
 0x4f3   : > { %v3172_v27 = vpop.eup %3171 }
 0x4f4   : > { %v1100_v28 = vmul.f32 %v3172_v27, %v3168_v15 }
 0x4f6   : > { %2930 = vmatprep.mubr.msk.f32.mxu0 %vm688_vm2, %v1100_v28 }
 0x4f7   : > { %2931 = vmatmul.mubr.msk.f32.vlgmr.msra.gmra.mxu0 %vm688_vm2, %v1102_v29 }
 0x4f8   : > { %2953 = vmatpush3.msra.mxu0 %v3650_v23 }
 0x4f9   : > { %2954 = vmatprep.subr.mxu0 %v3655_v24 }
 0x4fa   : > { %2955 = vmatpush3.msra.mxu0 %v3655_v24 }
 0x5b7   : > { %v3534_v32 = vpop.f32.mrf.mxu0 }
 0x5b9   : > { %v1175_v33 = vpop.f32.mrf.mxu0 }
 0x5ba   : > { %2949 = vmatprep.mubr.msk.f32.mxu1 %vm643_vm1, %v1175_v33 }
 0x5bb   : > { %2950 = vmatmul.mubr.msk.f32.vlgmr.msra.gmra.mxu1 %vm643_vm1, %v3534_v32 }
 0x5bc   : > { %2979 = vmatpush3.msra.mxu1 %v2699_v31  ;;  %2994 = vmatprep.mubr.msk.f32.mxu1 %vm643_vm1, %v1175_v33  ;;  %v2723_v31 = vld [vmem:[%s4005_s12 + $0x2] ss:$0 sm:$0xff] }
 0x5bd   : > { %2980 = vmatprep.subr.mxu1 %v2698_v34 }
 0x5be   : > { %2981 = vmatpush3.msra.mxu1 %v2698_v34 }
 0x5bf   : > { %2982 = vmatprep.subr.mxu1 %v2697_v35 }
 0x5c0   : > { %2983 = vmatpush3.msra.mxu1 %v2697_v35 }
 0x5c1   : > { %2984 = vmatprep.subr.mxu1 %v2696_v36 }
 0x5c2   : > { %2985 = vmatpush3.msra.mxu1 %v2696_v36 }
 0x5c3   : > { %2986 = vmatprep.subr.mxu1 %v2695_v37 }
 0x5c4   : > { %2987 = vmatpush3.msra.mxu1 %v2695_v37 }
 0x5c5   : > { %2988 = vmatprep.subr.mxu1 %v2694_v38 }
 0x5c6   : > { %2989 = vmatpush3.msra.mxu1 %v2694_v38 }
 0x5c7   : > { %2990 = vmatprep.subr.mxu1 %v2693_v39 }
 0x5c8   : > { %2991 = vmatpush3.msra.mxu1 %v2693_v39 }
 0x5c9   : > { %2992 = vmatprep.subr.mxu1 %v2692_v40 }
 0x5ca   : > { %2993 = vmatpush3.msra.mxu1 %v2692_v40 }
 0x5cb   : > { %2995 = vmatmul.mubr.msk.f32.vlgmr.msra.gmra.mxu1 %vm643_vm1, %v3534_v32  ;;  %3023 = vmatprep.subr.mxu1 %v2721_v41 }
 0x5cc   : > { %3024 = vmatpush3.msra.mxu1 %v2721_v41  ;;  %3039 = vmatprep.mubr.msk.f32.mxu1 %vm643_vm1, %v1175_v33 }
 0x5cd   : > { %3025 = vmatprep.subr.mxu1 %v2720_v42 }
 0x5ce   : > { %3026 = vmatpush3.msra.mxu1 %v2720_v42 }
 0x5cf   : > { %3027 = vmatprep.subr.mxu1 %v2719_v43 }
 0x5d0   : > { %3028 = vmatpush3.msra.mxu1 %v2719_v43 }
 0x5d1   : > { %3029 = vmatprep.subr.mxu1 %v2718_v44 }
 0x5d2   : > { %3030 = vmatpush3.msra.mxu1 %v2718_v44 }
 0x5d3   : > { %3031 = vmatprep.subr.mxu1 %v2717_v45 }
 0x5d4   : > { %3032 = vmatpush3.msra.mxu1 %v2717_v45 }
 0x5d5   : > { %3033 = vmatprep.subr.mxu1 %v2716_v46 }
 0x5d6   : > { %3034 = vmatpush3.msra.mxu1 %v2716_v46 }
 0x5d7   : > { %3035 = vmatprep.subr.mxu1 %v2715_v47 }
 0x5d8   : > { %3036 = vmatpush3.msra.mxu1 %v2715_v47 }
 0x5d9   : > { %3037 = vmatprep.subr.mxu1 %v2714_v48 }
 0x5da   : > { %3038 = vmatpush3.msra.mxu1 %v2714_v48 }
 0x5db   : > { %3040 = vmatmul.mubr.msk.f32.vlgmr.msra.gmra.mxu1 %vm643_vm1, %v3534_v32  ;;  %3068 = vmatprep.subr.mxu1 %v2743_v49 }
 0x5dc   : > { %3069 = vmatpush3.msra.mxu1 %v2743_v49  ;;  %3084 = vmatprep.mubr.msk.f32.mxu1 %vm643_vm1, %v1175_v33 }
 0x5dd   : > { %3070 = vmatprep.subr.mxu1 %v2742_v50 }
 0x5de   : > { %3071 = vmatpush3.msra.mxu1 %v2742_v50 }
 0x5df   : > { %3072 = vmatprep.subr.mxu1 %v2741_v51 }
 0x5e0   : > { %3073 = vmatpush3.msra.mxu1 %v2741_v51 }
 0x5e1   : > { %3074 = vmatprep.subr.mxu1 %v2740_v52 }
 0x5e2   : > { %3075 = vmatpush3.msra.mxu1 %v2740_v52  ;;  %v3689_v52 = vld [vmem:[%s4006_s13] ss:$0 sm:$0xff] }
 0x5e3   : > { %3076 = vmatprep.subr.mxu1 %v2739_v53 }
 0x5e4   : > { %3077 = vmatpush3.msra.mxu1 %v2739_v53 }
 0x5e5   : > { %3078 = vmatprep.subr.mxu1 %v2738_v54 }
 0x5e6   : > { %3079 = vmatpush3.msra.mxu1 %v2738_v54 }
 0x5e7   : > { %3080 = vmatprep.subr.mxu1 %v2737_v55 }
 0x5e8   : > { %3081 = vmatpush3.msra.mxu1 %v2737_v55 }
 0x5e9   : > { %3082 = vmatprep.subr.mxu1 %v2736_v56 }
 0x5ea   : > { %3083 = vmatpush3.msra.mxu1 %v2736_v56 }
 0x5eb   : > { %3085 = vmatmul.mubr.msk.f32.vlgmr.msra.gmra.mxu1 %vm643_vm1, %v3534_v32 }
 0x67b   : > { %v2951_v58 = vpop.f32.mrf.mxu1 }
 0x67c   : > { %v1277_v59 = vadd.f32 %v2951_v58, %v2681_v57 }
 0x67d   : > { %v1271_v60 = vpop.f32.mrf.mxu1 }
 0x67e   : > { %v3621_v61 = vadd.f32 %v1277_v59, %v3448_v13  ;;  %v1272_v62 = vadd.f32 %v2681_v57, %v1271_v60  ;;  %v3696_v57 = vld [vmem:[%s4007_s14] ss:$0 sm:$0xff]  ;;  %v3705_v60 = vld [vmem:[%s4010_s17 + $0x38] sm:$0xff] }
 0x67f   : > { %2959 = vmatprep.subr.mxu0 %v3705_v60  ;;  %3094 = vmatprep.subr.mxu1 %v3705_v60 }
 0x680   : > { %v3624_v63 = vadd.f32 %v1272_v62, %v3441_v8  ;;  %v1285_v0 = vsel %vm688_vm2, %v3621_v61, 0.0  ;;  %v3713_v62 = vld [vmem:[%s4010_s17 + $0x30] sm:$0xff]  ;;  %3095 = vmatpush3.msra.mxu1 %v3705_v60 }
 0x681   : > { %1286 = vadd.xlane.f32.xlu1 %v1285_v0  ;;  %3096 = vmatprep.subr.mxu1 %v3713_v62  ;;  %v3722_v0 = vld [vmem:[%s4010_s17 + $0x28] sm:$0xff] }
 0x682   : > { %v1282_v1 = vsel %vm688_vm2, %v3624_v63, 0.0  ;;  %3097 = vmatpush3.msra.mxu1 %v3713_v62 }
 0x683   : > { %1283 = vadd.xlane.f32.xlu0 %v1282_v1  ;;  %3098 = vmatprep.subr.mxu1 %v3722_v0  ;;  %v3731_v1 = vld [vmem:[%s4010_s17 + $0x20] sm:$0xff] }
 0x684   : > { %3099 = vmatpush3.msra.mxu1 %v3722_v0 }
 0x685   : > { %3100 = vmatprep.subr.mxu1 %v3731_v1 }
 0x686   : > { %3101 = vmatpush3.msra.mxu1 %v3731_v1 }
 0x68b   : > { %v2996_v2 = vpop.f32.mrf.mxu1 }
 0x68c   : > { %v1623_v9 = vadd.f32 %v2996_v2, %v2701_v3  ;;  %v3740_v2 = vld [vmem:[%s4010_s17 + $0x18] sm:$0xff] }
 0x68d   : > { %v1617_v6 = vpop.f32.mrf.mxu1  ;;  %3102 = vmatprep.subr.mxu1 %v3740_v2 }
 0x68e   : > { %v1618_v12 = vadd.f32 %v2701_v3, %v1617_v6  ;;  %v3636_v16 = vadd.f32 %v1623_v9, %v3448_v13  ;;  %v3749_v3 = vld [vmem:[%s4010_s17 + $0x10] sm:$0xff]  ;;  %3103 = vmatpush3.msra.mxu1 %v3740_v2 }
 0x68f   : > { %3104 = vmatprep.subr.mxu1 %v3749_v3 }
 0x690   : > { %v3640_v19 = vadd.f32 %v1618_v12, %v3441_v8  ;;  %v1631_v21 = vsel %vm688_vm2, %v3636_v16, 0.0  ;;  %3105 = vmatpush3.msra.mxu1 %v3749_v3 }
 0x692   : > { %v1628_v22 = vsel %vm688_vm2, %v3640_v19, 0.0 }
 0x69b   : > { %v3041_v27 = vpop.f32.mrf.mxu1 }
 0x69c   : > { %v1970_v37 = vadd.f32 %v3041_v27, %v2723_v31 }
 0x69d   : > { %v1964_v35 = vpop.f32.mrf.mxu1 }
 0x69e   : > { %v1965_v40 = vadd.f32 %v2723_v31, %v1964_v35  ;;  %v3673_v43 = vadd.f32 %v1970_v37, %v3448_v13 }
 0x6a0   : > { %v3679_v46 = vadd.f32 %v1965_v40, %v3441_v8  ;;  %v1978_v48 = vsel %vm688_vm2, %v3673_v43, 0.0 }
 0x6a2   : > { %v1975_v49 = vsel %vm688_vm2, %v3679_v46, 0.0 }
 0x70a   : > { %v1287_v4 = vpop.xlane.xlu1 %1286 }
 0x70b   : > { %v1289_v5 = vmul.f32 0.0625, %v1287_v4  ;;  %v3756_v4 = vld [vmem:[%s4010_s17 + $0x8] sm:$0xff] }
 0x70c   : > { %v1284_v7 = vpop.xlane.xlu0 %1283  ;;  %3106 = vmatprep.subr.mxu1 %v3756_v4 }
 0x70d   : > { %v1291_v10 = vsub.f32 %v3621_v61, %v1289_v5  ;;  %v1288_v11 = vmul.f32 0.0625, %v1284_v7  ;;  %v3763_v5 = vld [vmem:[%s4010_s17] sm:$0xff]  ;;  %3107 = vmatpush3.msra.mxu1 %v3756_v4  ;;  %v3086_v7 = vpop.f32.mrf.mxu1 }
 0x70e   : > { %3108 = vmatprep.subr.mxu1 %v3763_v5 }
 0x70f   : > { %v1290_v14 = vsub.f32 %v3624_v63, %v1288_v11  ;;  %v1293_v15 = vmul.f32 %v1291_v10, %v1291_v10  ;;  %3109 = vmatpush3.msra.mxu1 %v3763_v5 }
 0x711   : > { %v1297_v17 = vsel %vm688_vm2, %v1293_v15, 0.0  ;;  %v1292_v18 = vmul.f32 %v1290_v14, %v1290_v14 }
 0x712   : > { %1298 = vadd.xlane.f32.xlu1 %v1297_v17 }
 0x713   : > { %v1294_v20 = vsel %vm688_vm2, %v1292_v18, 0.0 }
 0x714   : > { %1295 = vadd.xlane.f32.xlu0 %v1294_v20 }
 0x716   : > { %1632 = vadd.xlane.f32.xlu1 %v1631_v21 }
 0x718   : > { %1629 = vadd.xlane.f32.xlu0 %v1628_v22 }
 0x79b   : > { %v1299_v25 = vpop.xlane.xlu1 %1298 }
 0x79c   : > { %v1301_v26 = vmul.f32 0.0625, %v1299_v25 }
 0x79d   : > { %v1296_v28 = vpop.xlane.xlu0 %1295 }
 0x79e   : > { %v1303_v29 = vadd.f32 1e-05, %v1301_v26  ;;  %v1300_v30 = vmul.f32 0.0625, %v1296_v28 }
 0x79f   : > { %v1633_v32 = vpop.xlane.xlu1 %1632 }
 0x7a0   : > { %3173 = vrsqrt.f32 %v1303_v29  ;;  %v1302_v33 = vadd.f32 1e-05, %v1300_v30  ;;  %v1635_v34 = vmul.f32 0.0625, %v1633_v32  ;;  %v3803_v32 = vld [vmem:[%s4009_s16] ss:$0 sm:$0xff] }
 0x7a1   : > { %v1630_v36 = vpop.xlane.xlu0 %1629 }
 0x7a2   : > { %3175 = vrsqrt.f32 %v1302_v33  ;;  %v3665_v38 = vsub.f32 %v3636_v16, %v1635_v34  ;;  %v1634_v39 = vmul.f32 0.0625, %v1630_v36 }
 0x7a4   : > { %v3668_v41 = vsub.f32 %v3640_v19, %v1634_v39  ;;  %v1639_v42 = vmul.f32 %v3665_v38, %v3665_v38 }
 0x7a6   : > { %v1643_v44 = vsel %vm688_vm2, %v1639_v42, 0.0  ;;  %v1638_v45 = vmul.f32 %v3668_v41, %v3668_v41 }
 0x7a7   : > { %1644 = vadd.xlane.f32.xlu1 %v1643_v44 }
 0x7a8   : > { %v1640_v47 = vsel %vm688_vm2, %v1638_v45, 0.0 }
 0x7a9   : > { %1641 = vadd.xlane.f32.xlu0 %v1640_v47 }
 0x7ab   : > { %1979 = vadd.xlane.f32.xlu1 %v1978_v48 }
 0x7ad   : > { %v3174_v50 = vpop.eup %3173  ;;  %1976 = vadd.xlane.f32.xlu0 %v1975_v49 }
 0x7ae   : > { %v1307_v51 = vmul.f32 %v3174_v50, %v1291_v10  ;;  %v2745_v10 = vld [vmem:[%s4005_s12 + $0x3] ss:$0 sm:$0xff] }
 0x7af   : > { %v3176_v53 = vpop.eup %3175  ;;  %v2317_v17 = vadd.f32 %v3086_v7, %v2745_v10 }
 0x7b0   : > { %v1306_v54 = vmul.f32 %v3176_v53, %v1290_v14  ;;  %v1316_v55 = vmul.f32 %v3689_v52, %v1307_v51  ;;  %v2311_v14 = vpop.f32.mrf.mxu1 }
 0x7b1   : > { %v2312_v21 = vadd.f32 %v2745_v10, %v2311_v14  ;;  %v3787_v26 = vadd.f32 %v2317_v17, %v3448_v13 }
 0x7b2   : > { %v1315_v56 = vmul.f32 %v3689_v52, %v1306_v54  ;;  %v1325_v59 = vadd.f32 %v3696_v57, %v1316_v55 }
 0x7b3   : > { %v3793_v29 = vadd.f32 %v2312_v21, %v3441_v8  ;;  %v2325_v31 = vsel %vm688_vm2, %v3787_v26, 0.0 }
 0x7b4   : > { %v1324_v58 = vadd.f32 %v3696_v57, %v1315_v56 }
 0x7b5   : > { %v2322_v13 = vsel %vm688_vm2, %v3793_v29, 0.0 }
 0x7b6   : > { %2956 = vmatprep.mubr.msk.f32.mxu0 %vm688_vm2, %v1324_v58 }
 0x7b7   : > { %2957 = vmatmul.mubr.msk.f32.vlgmr.msra.gmra.mxu0 %vm688_vm2, %v1325_v59 }
 0x7b8   : > { %2960 = vmatpush3.msra.mxu0 %v3705_v60 }
 0x7b9   : > { %2961 = vmatprep.subr.mxu0 %v3713_v62 }
 0x7ba   : > { %2962 = vmatpush3.msra.mxu0 %v3713_v62 }
 0x7bb   : > { %2963 = vmatprep.subr.mxu0 %v3722_v0 }
 0x7bc   : > { %2964 = vmatpush3.msra.mxu0 %v3722_v0 }
 0x7bd   : > { %2965 = vmatprep.subr.mxu0 %v3731_v1 }
 0x7be   : > { %2966 = vmatpush3.msra.mxu0 %v3731_v1 }
 0x7bf   : > { %2967 = vmatprep.subr.mxu0 %v3740_v2 }
 0x7c0   : > { %2968 = vmatpush3.msra.mxu0 %v3740_v2 }
 0x7c1   : > { %2969 = vmatprep.subr.mxu0 %v3749_v3 }
 0x7c2   : > { %2970 = vmatpush3.msra.mxu0 %v3749_v3 }
 0x7c3   : > { %2971 = vmatprep.subr.mxu0 %v3756_v4 }
 0x7c4   : > { %2972 = vmatpush3.msra.mxu0 %v3756_v4 }
 0x7c5   : > { %2973 = vmatprep.subr.mxu0 %v3763_v5 }
 0x7c6   : > { %2974 = vmatpush3.msra.mxu0 %v3763_v5 }
 0x7c7   : > { %2997 = vmatprep.subr.mxu0 %v3650_v23 }
 0x830   : > { %v1645_v6 = vpop.xlane.xlu1 %1644 }
 0x831   : > { %v1647_v42 = vmul.f32 0.0625, %v1645_v6 }
 0x832   : > { %v1642_v9 = vpop.xlane.xlu0 %1641 }
 0x833   : > { %v1646_v35 = vmul.f32 0.0625, %v1642_v9  ;;  %v1649_v50 = vadd.f32 1e-05, %v1647_v42 }
 0x834   : > { %v1980_v11 = vpop.xlane.xlu1 %1979 }
 0x835   : > { %v1982_v12 = vmul.f32 0.0625, %v1980_v11  ;;  %v1648_v44 = vadd.f32 1e-05, %v1646_v35 }
 0x836   : > { %v1977_v15 = vpop.xlane.xlu0 %1976 }
 0x837   : > { %v3779_v18 = vsub.f32 %v3673_v43, %v1982_v12  ;;  %v1981_v20 = vmul.f32 0.0625, %v1977_v15  ;;  %3177 = vrsqrt.f32 %v1648_v44 }
 0x839   : > { %v3782_v22 = vsub.f32 %v3679_v46, %v1981_v20  ;;  %v1986_v25 = vmul.f32 %v3779_v18, %v3779_v18 }
 0x83b   : > { %v1990_v27 = vsel %vm688_vm2, %v1986_v25, 0.0  ;;  %v1985_v28 = vmul.f32 %v3782_v22, %v3782_v22 }
 0x83c   : > { %1991 = vadd.xlane.f32.xlu1 %v1990_v27 }
 0x83d   : > { %v1987_v30 = vsel %vm688_vm2, %v1985_v28, 0.0 }
 0x83e   : > { %1988 = vadd.xlane.f32.xlu0 %v1987_v30 }
 0x840   : > { %2326 = vadd.xlane.f32.xlu1 %v2325_v31 }
 0x842   : > { %2323 = vadd.xlane.f32.xlu0 %v2322_v13 }
 0x844   : > { %v3178_v55 = vpop.eup %3177 }
 0x845   : > { %v1652_v7 = vmul.f32 %v3178_v55, %v3668_v41 }
 0x847   : > { %v1661_v14 = vmul.f32 %v3689_v52, %v1652_v7 }
 0x849   : > { %v1670_v21 = vadd.f32 %v3696_v57, %v1661_v14 }
 0x877   : > { %v2958_v33 = vpop.f32.mrf.mxu0 }
 0x878   : > { %v1413_v8 = vadd.f32 %v2958_v33, %v3803_v32 }
 0x879   : > { %v1407_v34 = vpop.f32.mrf.mxu0 }
 0x87a   : > { %v1417_v36 = vmul.f32 %v1413_v8, %v1413_v8  ;;  %v1408_v37 = vadd.f32 %v3803_v32, %v1407_v34 }
 0x87c   : > { %v1419_v39 = vmul.f32 %v1417_v36, %v1413_v8  ;;  %v1416_v40 = vmul.f32 %v1408_v37, %v1408_v37 }
 0x87e   : > { %v1421_v45 = vmul.f32 0.044715, %v1419_v39  ;;  %v1418_v47 = vmul.f32 %v1416_v40, %v1408_v37 }
 0x880   : > { %v1423_v48 = vadd.f32 %v1421_v45, %v1413_v8  ;;  %v1420_v49 = vmul.f32 0.044715, %v1418_v47 }
 0x882   : > { %v1425_v51 = vmul.f32 0.7978846, %v1423_v48  ;;  %v1422_v53 = vadd.f32 %v1420_v49, %v1408_v37 }
 0x884   : > { %3179 = vtanh.f32 %v1425_v51  ;;  %v1424_v54 = vmul.f32 0.7978846, %v1422_v53 }
 0x885   : > { %3181 = vrsqrt.f32 %v1649_v50 }
 0x886   : > { %3183 = vtanh.f32 %v1424_v54 }
 0x891   : > { %v3180_v56 = vpop.eup %3179 }
 0x892   : > { %v3182_v58 = vpop.eup %3181  ;;  %v1429_v59 = vadd.f32 1.0, %v3180_v56 }
 0x893   : > { %v3184_v6 = vpop.eup %3183  ;;  %v1653_v11 = vmul.f32 %v3182_v58, %v3665_v38 }
 0x894   : > { %v1428_v9 = vadd.f32 1.0, %v3184_v6  ;;  %v1431_v10 = vmul.f32 0.5, %v1429_v59 }
 0x895   : > { %v1662_v20 = vmul.f32 %v3689_v52, %v1653_v11 }
 0x896   : > { %v1430_v12 = vmul.f32 0.5, %v1428_v9  ;;  %v1433_v17 = vmul.f32 %v1431_v10, %v1413_v8 }
 0x897   : > { %v1671_v41 = vadd.f32 %v3696_v57, %v1662_v20 }
 0x898   : > { %v1432_v15 = vmul.f32 %v1430_v12, %v1408_v37  ;;  %v3853_v37 = vld [vmem:[%s4011_s18] ss:$0 sm:$0xff] }
 0x89a   : > { %2975 = vmatprep.mubr.msk.f32.mxu0 %vm643_vm1, %v1432_v15 }
 0x89b   : > { %2976 = vmatmul.mubr.msk.f32.vlgmr.msra.gmra.mxu0 %vm643_vm1, %v1433_v17 }
 0x89c   : > { %2998 = vmatpush3.msra.mxu0 %v3650_v23  ;;  %3001 = vmatprep.mubr.msk.f32.mxu0 %vm688_vm2, %v1670_v21 }
 0x89d   : > { %2999 = vmatprep.subr.mxu0 %v3655_v24 }
 0x89e   : > { %3000 = vmatpush3.msra.mxu0 %v3655_v24 }
 0x89f   : > { %3002 = vmatmul.mubr.msk.f32.vlgmr.msra.gmra.mxu0 %vm688_vm2, %v1671_v41  ;;  %3004 = vmatprep.subr.mxu0 %v3705_v60 }
 0x8a0   : > { %3005 = vmatpush3.msra.mxu0 %v3705_v60 }
 0x8a1   : > { %3006 = vmatprep.subr.mxu0 %v3713_v62 }
 0x8a2   : > { %3007 = vmatpush3.msra.mxu0 %v3713_v62 }
 0x8a3   : > { %3008 = vmatprep.subr.mxu0 %v3722_v0 }
 0x8a4   : > { %3009 = vmatpush3.msra.mxu0 %v3722_v0 }
 0x8a5   : > { %3010 = vmatprep.subr.mxu0 %v3731_v1 }
 0x8a6   : > { %3011 = vmatpush3.msra.mxu0 %v3731_v1 }
 0x8a7   : > { %3012 = vmatprep.subr.mxu0 %v3740_v2 }
 0x8a8   : > { %3013 = vmatpush3.msra.mxu0 %v3740_v2 }
 0x8a9   : > { %3014 = vmatprep.subr.mxu0 %v3749_v3 }
 0x8aa   : > { %3015 = vmatpush3.msra.mxu0 %v3749_v3 }
 0x8ab   : > { %3016 = vmatprep.subr.mxu0 %v3756_v4 }
 0x8ac   : > { %3017 = vmatpush3.msra.mxu0 %v3756_v4 }
 0x8ad   : > { %3018 = vmatprep.subr.mxu0 %v3763_v5 }
 0x8ae   : > { %3019 = vmatpush3.msra.mxu0 %v3763_v5 }
 0x8af   : > { %3042 = vmatprep.subr.mxu0 %v3650_v23 }
 0x8c5   : > { %v1992_v38 = vpop.xlane.xlu1 %1991 }
 0x8c6   : > { %v1994_v56 = vmul.f32 0.0625, %v1992_v38 }
 0x8c7   : > { %v1989_v25 = vpop.xlane.xlu0 %1988 }
 0x8c8   : > { %v1993_v51 = vmul.f32 0.0625, %v1989_v25  ;;  %v1996_v10 = vadd.f32 1e-05, %v1994_v56 }
 0x8c9   : > { %v2327_v27 = vpop.xlane.xlu1 %2326 }
 0x8ca   : > { %v2329_v28 = vmul.f32 0.0625, %v2327_v27  ;;  %v1995_v58 = vadd.f32 1e-05, %v1993_v51 }
 0x8cb   : > { %v2324_v30 = vpop.xlane.xlu0 %2323 }
 0x8cc   : > { %v3838_v31 = vsub.f32 %v3787_v26, %v2329_v28  ;;  %v2328_v13 = vmul.f32 0.0625, %v2324_v30  ;;  %3185 = vrsqrt.f32 %v1995_v58 }
 0x8ce   : > { %v3841_v33 = vsub.f32 %v3793_v29, %v2328_v13  ;;  %v2333_v8 = vmul.f32 %v3838_v31, %v3838_v31 }
 0x8d0   : > { %v2337_v34 = vsel %vm688_vm2, %v2333_v8, 0.0  ;;  %v2332_v35 = vmul.f32 %v3841_v33, %v3841_v33 }
 0x8d1   : > { %2338 = vadd.xlane.f32.xlu1 %v2337_v34 }
 0x8d2   : > { %v2334_v36 = vsel %vm688_vm2, %v2332_v35, 0.0 }
 0x8d3   : > { %2335 = vadd.xlane.f32.xlu0 %v2334_v36 }
 0x8d9   : > { %v3186_v14 = vpop.eup %3185 }
 0x8da   : > { %v1999_v21 = vmul.f32 %v3186_v14, %v3782_v22 }
 0x8dc   : > { %v2008_v30 = vmul.f32 %v3689_v52, %v1999_v21 }
 0x8de   : > { %v2017_v35 = vadd.f32 %v3696_v57, %v2008_v30 }
 0x95b   : > { %v2977_v39 = vpop.f32.mrf.mxu0 }
 0x95c   : > { %v1527_v40 = vadd.f32 %v2977_v39, %v3853_v37 }
 0x95d   : > { %v1521_v42 = vpop.f32.mrf.mxu0 }
 0x95e   : > { %v1531_v44 = vadd.f32 %v1527_v40, %v3621_v61  ;;  %v1522_v45 = vadd.f32 %v3853_v37, %v1521_v42 }
 0x95f   : > { %v3003_v47 = vpop.f32.mrf.mxu0 }
 0x960   : > { %1533 = vst.msk [vmem:[%s3860_s22 + $0x8] sm:$0xff] %vm688_vm2, %v1531_v44  ;;  %v1530_v48 = vadd.f32 %v1522_v45, %v3624_v63  ;;  %v1759_v49 = vadd.f32 %v3003_v47, %v3803_v32 }
 0x961   : > { %v1753_v50 = vpop.f32.mrf.mxu0 }
 0x962   : > { %1532 = vst.msk [vmem:[%s3860_s22] sm:$0xff] %vm688_vm2, %v1530_v48  ;;  %v1763_v53 = vmul.f32 %v1759_v49, %v1759_v49  ;;  %v1754_v61 = vadd.f32 %v3803_v32, %v1753_v50 }
 0x964   : > { %v1765_v54 = vmul.f32 %v1763_v53, %v1759_v49  ;;  %v1762_v55 = vmul.f32 %v1754_v61, %v1754_v61 }
 0x966   : > { %v1767_v59 = vmul.f32 0.044715, %v1765_v54  ;;  %v1764_v7 = vmul.f32 %v1762_v55, %v1754_v61 }
 0x968   : > { %v1769_v6 = vadd.f32 %v1767_v59, %v1759_v49  ;;  %v1766_v9 = vmul.f32 0.044715, %v1764_v7 }
 0x96a   : > { %v1771_v63 = vmul.f32 0.7978846, %v1769_v6  ;;  %v1768_v11 = vadd.f32 %v1766_v9, %v1754_v61 }
 0x96c   : > { %3187 = vtanh.f32 %v1771_v63  ;;  %v1770_v12 = vmul.f32 0.7978846, %v1768_v11 }
 0x96d   : > { %3189 = vrsqrt.f32 %v1996_v10 }
 0x96e   : > { %3191 = vtanh.f32 %v1770_v12 }
 0x979   : > { %v3188_v15 = vpop.eup %3187 }
 0x97a   : > { %v3190_v17 = vpop.eup %3189  ;;  %v1775_v20 = vadd.f32 1.0, %v3188_v15 }
 0x97b   : > { %v3192_v41 = vpop.eup %3191  ;;  %v2000_v27 = vmul.f32 %v3190_v17, %v3779_v18 }
 0x97c   : > { %v1774_v38 = vadd.f32 1.0, %v3192_v41  ;;  %v1777_v25 = vmul.f32 0.5, %v1775_v20 }
 0x97d   : > { %v2009_v34 = vmul.f32 %v3689_v52, %v2000_v27 }
 0x97e   : > { %v1776_v28 = vmul.f32 0.5, %v1774_v38  ;;  %v1779_v8 = vmul.f32 %v1777_v25, %v1759_v49 }
 0x97f   : > { %v2018_v22 = vadd.f32 %v3696_v57, %v2009_v34 }
 0x980   : > { %v1778_v13 = vmul.f32 %v1776_v28, %v1754_v61 }
 0x982   : > { %3020 = vmatprep.mubr.msk.f32.mxu0 %vm643_vm1, %v1778_v13 }
 0x983   : > { %3021 = vmatmul.mubr.msk.f32.vlgmr.msra.gmra.mxu0 %vm643_vm1, %v1779_v8 }
 0x984   : > { %3043 = vmatpush3.msra.mxu0 %v3650_v23  ;;  %3046 = vmatprep.mubr.msk.f32.mxu0 %vm688_vm2, %v2017_v35 }
 0x985   : > { %3044 = vmatprep.subr.mxu0 %v3655_v24 }
 0x986   : > { %3045 = vmatpush3.msra.mxu0 %v3655_v24 }
 0x987   : > { %3047 = vmatmul.mubr.msk.f32.vlgmr.msra.gmra.mxu0 %vm688_vm2, %v2018_v22  ;;  %3049 = vmatprep.subr.mxu0 %v3705_v60 }
 0x988   : > { %3050 = vmatpush3.msra.mxu0 %v3705_v60 }
 0x989   : > { %3051 = vmatprep.subr.mxu0 %v3713_v62 }
 0x98a   : > { %3052 = vmatpush3.msra.mxu0 %v3713_v62 }
 0x98b   : > { %3053 = vmatprep.subr.mxu0 %v3722_v0 }
 0x98c   : > { %3054 = vmatpush3.msra.mxu0 %v3722_v0 }
 0x98d   : > { %3055 = vmatprep.subr.mxu0 %v3731_v1 }
 0x98e   : > { %3056 = vmatpush3.msra.mxu0 %v3731_v1 }
 0x98f   : > { %3057 = vmatprep.subr.mxu0 %v3740_v2 }
 0x990   : > { %3058 = vmatpush3.msra.mxu0 %v3740_v2 }
 0x991   : > { %3059 = vmatprep.subr.mxu0 %v3749_v3 }
 0x992   : > { %3060 = vmatpush3.msra.mxu0 %v3749_v3  ;;  %v2336_v3 = vpop.xlane.xlu0 %2335 }
 0x993   : > { %3061 = vmatprep.subr.mxu0 %v3756_v4  ;;  %v2340_v40 = vmul.f32 0.0625, %v2336_v3 }
 0x994   : > { %3062 = vmatpush3.msra.mxu0 %v3756_v4 }
 0x995   : > { %3063 = vmatprep.subr.mxu0 %v3763_v5  ;;  %v2342_v48 = vadd.f32 1e-05, %v2340_v40 }
 0x996   : > { %3064 = vmatpush3.msra.mxu0 %v3763_v5  ;;  %v2339_v5 = vpop.xlane.xlu1 %2338 }
 0x997   : > { %3087 = vmatprep.subr.mxu0 %v3650_v23  ;;  %v2341_v47 = vmul.f32 0.0625, %v2339_v5  ;;  %3193 = vrsqrt.f32 %v2342_v48 }
 0x999   : > { %v2343_v61 = vadd.f32 1e-05, %v2341_v47 }
 0x9a4   : > { %v3194_v56 = vpop.eup %3193 }
 0x9a5   : > { %v2346_v6 = vmul.f32 %v3194_v56, %v3841_v33 }
 0x9a7   : > { %v2355_v14 = vmul.f32 %v3689_v52, %v2346_v6 }
 0x9a9   : > { %v2364_v21 = vadd.f32 %v3696_v57, %v2355_v14 }
 0xa43   : > { %v3022_v60 = vpop.f32.mrf.mxu0 }
 0xa44   : > { %v1873_v62 = vadd.f32 %v3022_v60, %v3853_v37 }
 0xa45   : > { %v1867_v0 = vpop.f32.mrf.mxu0 }
 0xa46   : > { %v1877_v1 = vadd.f32 %v1873_v62, %v3636_v16  ;;  %v1868_v2 = vadd.f32 %v3853_v37, %v1867_v0 }
 0xa47   : > { %v3048_v18 = vpop.f32.mrf.mxu0 }
 0xa48   : > { %2713 = vst.msk [vmem:[%s3860_s22 + $0x18] sm:$0xff] %vm688_vm2, %v1877_v1  ;;  %v1876_v4 = vadd.f32 %v1868_v2, %v3640_v19  ;;  %v2106_v36 = vadd.f32 %v3048_v18, %v3803_v32 }
 0xa49   : > { %v2100_v39 = vpop.f32.mrf.mxu0 }
 0xa4a   : > { %2712 = vst.msk [vmem:[%s3860_s22 + $0x10] sm:$0xff] %vm688_vm2, %v1876_v4  ;;  %v2110_v42 = vmul.f32 %v2106_v36, %v2106_v36  ;;  %v2101_v44 = vadd.f32 %v3803_v32, %v2100_v39 }
 0xa4c   : > { %v2112_v45 = vmul.f32 %v2110_v42, %v2106_v36  ;;  %v2109_v16 = vmul.f32 %v2101_v44, %v2101_v44 }
 0xa4e   : > { %v2114_v49 = vmul.f32 0.044715, %v2112_v45  ;;  %v2111_v50 = vmul.f32 %v2109_v16, %v2101_v44 }
 0xa50   : > { %v2116_v51 = vadd.f32 %v2114_v49, %v2106_v36  ;;  %v2113_v53 = vmul.f32 0.044715, %v2111_v50 }
 0xa52   : > { %v2118_v19 = vmul.f32 0.7978846, %v2116_v51  ;;  %v2115_v54 = vadd.f32 %v2113_v53, %v2101_v44 }
 0xa54   : > { %3195 = vtanh.f32 %v2118_v19  ;;  %v2117_v55 = vmul.f32 0.7978846, %v2115_v54 }
 0xa55   : > { %3197 = vrsqrt.f32 %v2343_v61 }
 0xa56   : > { %3199 = vtanh.f32 %v2117_v55 }
 0xa61   : > { %v3196_v58 = vpop.eup %3195 }
 0xa62   : > { %v3198_v59 = vpop.eup %3197  ;;  %v2122_v7 = vadd.f32 1.0, %v3196_v58 }
 0xa63   : > { %v3200_v9 = vpop.eup %3199  ;;  %v2347_v11 = vmul.f32 %v3198_v59, %v3838_v31 }
 0xa64   : > { %v2121_v10 = vadd.f32 1.0, %v3200_v9  ;;  %v2124_v63 = vmul.f32 0.5, %v2122_v7 }
 0xa65   : > { %v2356_v20 = vmul.f32 %v3689_v52, %v2347_v11 }
 0xa66   : > { %v2123_v12 = vmul.f32 0.5, %v2121_v10  ;;  %v2126_v17 = vmul.f32 %v2124_v63, %v2106_v36 }
 0xa67   : > { %v2365_v31 = vadd.f32 %v3696_v57, %v2356_v20 }
 0xa68   : > { %v2125_v15 = vmul.f32 %v2123_v12, %v2101_v44 }
 0xa6a   : > { %3065 = vmatprep.mubr.msk.f32.mxu0 %vm643_vm1, %v2125_v15 }
 0xa6b   : > { %3066 = vmatmul.mubr.msk.f32.vlgmr.msra.gmra.mxu0 %vm643_vm1, %v2126_v17 }
 0xa6c   : > { %3088 = vmatpush3.msra.mxu0 %v3650_v23  ;;  %3091 = vmatprep.mubr.msk.f32.mxu0 %vm688_vm2, %v2364_v21 }
 0xa6d   : > { %3089 = vmatprep.subr.mxu0 %v3655_v24 }
 0xa6e   : > { %3090 = vmatpush3.msra.mxu0 %v3655_v24 }
 0xa6f   : > { %3092 = vmatmul.mubr.msk.f32.vlgmr.msra.gmra.mxu0 %vm688_vm2, %v2365_v31 }
 0xb2b   : > { %v3067_v52 = vpop.f32.mrf.mxu0 }
 0xb2c   : > { %v2220_v33 = vadd.f32 %v3067_v52, %v3853_v37 }
 0xb2d   : > { %v2214_v41 = vpop.f32.mrf.mxu0 }
 0xb2e   : > { %v2224_v38 = vadd.f32 %v2220_v33, %v3673_v43  ;;  %v2215_v25 = vadd.f32 %v3853_v37, %v2214_v41 }
 0xb2f   : > { %v3093_v23 = vpop.f32.mrf.mxu0 }
 0xb30   : > { %2735 = vst.msk [vmem:[%s3860_s22 + $0x28] sm:$0xff] %vm688_vm2, %v2224_v38  ;;  %v2223_v27 = vadd.f32 %v2215_v25, %v3679_v46  ;;  %v2453_v57 = vadd.f32 %v3093_v23, %v3803_v32 }
 0xb31   : > { %v2447_v28 = vpop.f32.mrf.mxu0 }
 0xb32   : > { %2734 = vst.msk [vmem:[%s3860_s22 + $0x20] sm:$0xff] %vm688_vm2, %v2223_v27  ;;  %v2457_v24 = vmul.f32 %v2453_v57, %v2453_v57  ;;  %v2448_v30 = vadd.f32 %v3803_v32, %v2447_v28 }
 0xb34   : > { %v2459_v13 = vmul.f32 %v2457_v24, %v2453_v57  ;;  %v2456_v8 = vmul.f32 %v2448_v30, %v2448_v30 }
 0xb36   : > { %v2461_v34 = vmul.f32 0.044715, %v2459_v13  ;;  %v2458_v35 = vmul.f32 %v2456_v8, %v2448_v30 }
 0xb38   : > { %v2463_v43 = vadd.f32 %v2461_v34, %v2453_v57  ;;  %v2460_v22 = vmul.f32 0.044715, %v2458_v35 }
 0xb3a   : > { %v2465_v60 = vmul.f32 0.7978846, %v2463_v43  ;;  %v2462_v62 = vadd.f32 %v2460_v22, %v2448_v30 }
 0xb3c   : > { %3201 = vtanh.f32 %v2465_v60  ;;  %v2464_v46 = vmul.f32 0.7978846, %v2462_v62 }
 0xb3e   : > { %3203 = vtanh.f32 %v2464_v46 }
 0xb49   : > { %v3202_v0 = vpop.eup %3201 }
 0xb4a   : > { %v2469_v1 = vadd.f32 1.0, %v3202_v0 }
 0xb4b   : > { %v3204_v2 = vpop.eup %3203 }
 0xb4c   : > { %v2468_v3 = vadd.f32 1.0, %v3204_v2  ;;  %v2471_v18 = vmul.f32 0.5, %v2469_v1 }
 0xb4e   : > { %v2470_v32 = vmul.f32 0.5, %v2468_v3  ;;  %v2473_v36 = vmul.f32 %v2471_v18, %v2453_v57 }
 0xb50   : > { %v2472_v4 = vmul.f32 %v2470_v32, %v2448_v30 }
 0xb52   : > { %3110 = vmatprep.mubr.msk.f32.mxu1 %vm643_vm1, %v2472_v4 }
 0xb53   : > { %3111 = vmatmul.mubr.msk.f32.vlgmr.msra.gmra.mxu1 %vm643_vm1, %v2473_v36 }
 0xc13   : > { %v3112_v39 = vpop.f32.mrf.mxu1 }
 0xc14   : > { %v2567_v5 = vadd.f32 %v3112_v39, %v3853_v37 }
 0xc15   : > { %v2561_v40 = vpop.f32.mrf.mxu1 }
 0xc16   : > { %v2571_v42 = vadd.f32 %v2567_v5, %v3787_v26  ;;  %v2562_v44 = vadd.f32 %v3853_v37, %v2561_v40 }
 0xc18   : > { %2757 = vst.msk [vmem:[%s3860_s22 + $0x38] sm:$0xff] %vm688_vm2, %v2571_v42  ;;  %v2570_v45 = vadd.f32 %v2562_v44, %v3793_v29 }
 0xc1a   : > { %2756 = vst.msk [vmem:[%s3860_s22 + $0x30] sm:$0xff] %vm688_vm2, %v2570_v45 }
 0xc1b   : > { %3218 = shalt.err (!%p3215_p3)
}
 0xc1c   : > { %s3219_s21 = scalar_lea.hbm %s3942_s0, 1024  ;;  %s3223_s26 = scalar_lea.hbm %s4012_s19, 2048 }
 0xc1d   : > { %p3220_p4 = scmp.ne.s32.totalorder %s3942_s0, %s3219_s21  ;;  %p3224_p9 = scmp.lt.s32.totalorder %s3942_s0, %s4012_s19 }
 0xc1e   : > { %p3225_p10 = scmp.lt.s32.totalorder %s3223_s26, %s3219_s21 }
 0xc1f   : > { %p3221_p7 = pnand %p3220_p4, %p3410_p5 }
 0xc20   : > { %p3226_p11 = por %p3225_p10, %p3224_p9 }
 0xc21   : > { %p3222_p8 = pneg %p3221_p7 }
 0xc23   : > { %p3227_p12 = pnand %p3226_p11, %p3222_p8 }
 0xc25   : > { %3230 = shalt.err (!%p3227_p12)
}
 0xc26   : > { %s3270_s24 = smov 128   ;;  %s3271_s28 = smov 8  }
 0xc27   : > { %3113 = dma.vmem_to_hbm [thread:$0]  (%p3410_p5), %s3944_s20, 1024, %s3942_s0, %s3953_s1, %s3270_s24, %s3270_s24, %s3271_s28  }
 0xc28 PF: > { %s4041_s23 = sld [smem:[#allocation7_spill]] }
 0xc29   : > { %s4042_s22 = sld [smem:[#allocation5_spill]] }
 0xc2e   : > { %p3119_p13 = scmp.ge.s32.totalorder %s4041_s23, 2 }
 0xc2f   : > { %s2604_s5 = sand.u32 1, %s4042_s22  }
 0xc30   : > { %p3116_p0 = pnand %p3119_p13, %p3414_p6  ;;  %s2605_s4 = scalar_lea.sflag [#allocation3], %s2604_s5 }
 0xc32   : > { %p3117_p1 = pneg %p3116_p0 }
 0xc34   : > { %3248 = dma.done.wait (%p3117_p1), %s2605_s4, 1024  }
 0xc35   : > { %3250 = vsyncadd (%p3117_p1), %s2605_s4, 4294966272  ;;  %s4044_s21 = sld [smem:[#allocation8_spill]]  ;;  %s4047_s0 = smov %s3257_s30 }
 0xc36   : > { %s4045_s26 = sld [smem:[#allocation6_spill]] }
 0xc37   : > { %s4046_s20 = sld [smem:[#allocation9_spill]] }
 0xc3b   : > { %p29_p2 = scmp.ge.s32.totalorder %s4044_s21, 4  }
 0xc3c   : > { %s4048_s30 = smov %s4045_s26 }
 0xc3d   :  { %31 = sbr.rel (!%p29_p2) target bundleno = 10 (0xa), region = 140 }
 0xc42   :  { %2610 = vsyncpa [#allocation3], 1 }
 0xc43   :  { %2612 = vsyncpa [#allocation3 + $0x1], 1 }

</bundles_post_ra>
